<compile_context>
chip_gen: v7x
topology: tpu7x:2x2x1
jax: 0.10.0
libtpu: 0.0.40
codegen_flags: <defaults>
</compile_context>

<pallas_src>
import functools

import jax
import jax.numpy as jnp
import numpy as np
from jax.experimental import pallas as pl
from jax.experimental.pallas import tpu as pltpu


def _leaky(x, slope=0.05):
    # The module uses nn.LeakyReLU(0.05) explicitly (not the 0.01 default).
    return jnp.where(x >= 0, x, slope * x)


def _round8(n):
    return -(-n // 8) * 8


def _decoder_kernel(zt_ref, w1t_ref, b1_ref,
                    wc1_ref, bc1_ref, wc2_ref, bc2_ref, wc3_ref, bc3_ref,
                    wft_ref, bf_ref, out_ref,
                    x1_ref, x2_ref, x3_ref, xcol_ref,
                    *, BT, L, C, K):
    P = L + 4                 # padded length: 2 zero "l rows" on each side
    LB = L * BT               # valid columns per grid step (multiple of 128)
    PAD = 2 * BT              # shared zero-pad columns at each end of a slab
    C_pad = x1_ref.shape[0]

    # Zero only what the matmuls may read but is never written below: the
    # shared pad bands of each slab, and x1's padded channel rows (their
    # weights are zero, but stale VMEM could hold inf/nan).  Interiors are
    # fully overwritten every step, so no full-buffer zeroing.
    for xref in (x1_ref, x2_ref, x3_ref):
        rows = xref.shape[0]
        xref[:, 0:PAD] = jnp.zeros((rows, PAD), jnp.float32)
        xref[:, PAD + LB:P * BT] = jnp.zeros((rows, PAD), jnp.float32)
    if C_pad > C:
        x1_ref[C:C_pad, :] = jnp.zeros((C_pad - C, P * BT), jnp.float32)

    # ---- ln1 for the whole tile, transposed: (C*L, Din) @ (Din, BT) ---------
    ht = _leaky(jnp.dot(w1t_ref[...], zt_ref[...],
                        preferred_element_type=jnp.float32) + b1_ref[...])   # (C*L, BT)

    # Scatter into conv layout (channels on sublanes, (l, b) on lanes):
    # C*L lane-aligned (1, BT) row stores, count independent of batch size.
    for c in range(C):
        for l in range(L):
            x1_ref[c:c + 1, (l + 2) * BT:(l + 3) * BT] = \
                ht[c * L + l:c * L + l + 1, :]

    def conv_layer(xp_ref, wcol_ref, bias_ref):
        cin = xp_ref.shape[0]
        # im2col: K lane-aligned shifted-window copies (offsets k*BT), then
        # ONE (Cout, K*cin) @ (K*cin, LB) MXU matmul.
        for k in range(K):
            xcol_ref[k * cin:(k + 1) * cin, :] = xp_ref[:, k * BT:k * BT + LB]
        y = jnp.dot(wcol_ref[...], xcol_ref[0:K * cin, :],
                    preferred_element_type=jnp.float32)
        return _leaky(y + bias_ref[...])                                      # (Cout, LB)

    y1 = conv_layer(x1_ref, wc1_ref, bc1_ref)
    x2_ref[:, PAD:PAD + LB] = y1            # one full-slab interior store
    y2 = conv_layer(x2_ref, wc2_ref, bc2_ref)
    x3_ref[:, PAD:PAD + LB] = y2
    y3 = conv_layer(x3_ref, wc3_ref, bc3_ref)                                 # (D3_pad, LB)

    # ---- final Linear: one (Dout_pad, D3_pad) @ (D3_pad, LB) matmul ---------
    out_ref[...] = jnp.dot(wft_ref[...], y3,
                           preferred_element_type=jnp.float32) + bf_ref[...]


def pack_params(w1, b1, convs, wf, bf):
    """Wrapper-side packing: transpose ln1, im2col-pack conv weights, and
    zero-pad all channel dims to sublane multiples of 8."""
    Din, H = w1.shape
    K, C, D1 = convs[0][0].shape
    D2 = convs[1][0].shape[2]
    D3 = convs[2][0].shape[2]
    Dout = wf.shape[1]
    C_p, D1_p, D2_p, D3_p, Do_p = map(_round8, (C, D1, D2, D3, Dout))

    def pack_conv(w, b, cin_p, cout_p):
        k, cin, cout = w.shape                              # w[k, c, o]
        wt = jnp.transpose(w, (2, 0, 1))                    # (cout, K, cin)
        wt = jnp.pad(wt, ((0, cout_p - cout), (0, 0), (0, cin_p - cin)))
        bcol = jnp.pad(b, (0, cout_p - cout)).reshape(cout_p, 1)
        return wt.reshape(cout_p, k * cin_p), bcol          # wcol[o, k*cin_p + c]

    wc1, bc1 = pack_conv(*convs[0], C_p, D1_p)
    wc2, bc2 = pack_conv(*convs[1], D1_p, D2_p)
    wc3, bc3 = pack_conv(*convs[2], D2_p, D3_p)
    wft = jnp.pad(wf.T, ((0, Do_p - Dout), (0, D3_p - D3)))
    bfc = jnp.pad(bf, (0, Do_p - Dout)).reshape(Do_p, 1)
    arrays = (w1.T, b1.reshape(H, 1), wc1, bc1, wc2, bc2, wc3, bc3, wft, bfc)
    meta = dict(K=K, C=C, C_pad=C_p, D1_pad=D1_p, D2_pad=D2_p, D3_pad=D3_p,
                Dout=Dout, Dout_pad=Do_p)
    return arrays, meta


def spatial_decoder_pallas(z, arrays, meta, *, node_num, block_b=128):
    """Runs the SpatialDecoder forward; returns (B, node_num, output_dim)."""
    (w1t, b1c, wc1, bc1, wc2, bc2, wc3, bc3, wft, bfc) = arrays
    B, Din = z.shape
    L = node_num
    C, C_pad, K = meta["C"], meta["C_pad"], meta["K"]
    D1p, D2p = meta["D1_pad"], meta["D2_pad"]
    Do_p, Dout = meta["Dout_pad"], meta["Dout"]
    BT = block_b
    assert BT % 128 == 0, "batch tile must be a multiple of 128 (lane-dense)"
    P = L + 4
    G = -(-B // BT)                    # batch tiles
    Bp = G * BT

    # Layout plumbing (outside the kernel): transpose z, pad batch to a tile.
    zt = jnp.zeros((Din, Bp), jnp.float32).at[:, :B].set(z.T.astype(jnp.float32))

    kernel = functools.partial(_decoder_kernel, BT=BT, L=L, C=C, K=K)
    weight_spec = lambda a: pl.BlockSpec(a.shape, lambda i: (0, 0))

    out_t = pl.pallas_call(
        kernel,
        out_shape=jax.ShapeDtypeStruct((Do_p, G * L * BT), jnp.float32),
        grid=(G,),
        in_specs=[pl.BlockSpec((Din, BT), lambda i: (0, i))] +
                 [weight_spec(a) for a in arrays],
        out_specs=pl.BlockSpec((Do_p, L * BT), lambda i: (0, i)),
        scratch_shapes=[
            pltpu.VMEM((C_pad, P * BT), jnp.float32),   # conv-1 padded input slab
            pltpu.VMEM((D1p, P * BT), jnp.float32),     # conv-2 padded input slab
            pltpu.VMEM((D2p, P * BT), jnp.float32),     # conv-3 padded input slab
            pltpu.VMEM((K * max(C_pad, D1p, D2p), L * BT), jnp.float32),  # im2col
        ],
        compiler_params=pltpu.CompilerParams(
            dimension_semantics=("parallel",)),
    )(zt, *arrays)

    # (Dout_pad, G*L*BT) -> (B, L, Dout): wrapper-side layout plumbing.
    out = out_t.reshape(Do_p, G, L, BT).transpose(1, 3, 2, 0).reshape(Bp, L, Do_p)
    return out[:B, :, :Dout]


def init_params(key, input_dim, output_dim, node_num, hidden_dim, hidden_conv_dims):
    """Deterministic synthetic parameters (PyTorch-default-style uniform init)."""
    hidden_dim = hidden_dim // node_num * node_num
    channel_dim = hidden_dim // node_num
    dims = [channel_dim] + list(hidden_conv_dims)
    keys = jax.random.split(key, 10)

    def uni(k, shape, fan_in):
        bound = 1.0 / np.sqrt(fan_in)
        return jax.random.uniform(k, shape, jnp.float32, -bound, bound)

    w1 = uni(keys[0], (input_dim, hidden_dim), input_dim)
    b1 = uni(keys[1], (hidden_dim,), input_dim)
    convs = []
    ki = 2
    for i in range(3):
        cin, cout = dims[i], dims[i + 1]
        w = uni(keys[ki], (5, cin, cout), cin * 5)          # (K, Cin, Cout)
        b = uni(keys[ki + 1], (cout,), cin * 5)
        convs.append((w, b))
        ki += 2
    wf = uni(keys[8], (hidden_conv_dims[2], output_dim), hidden_conv_dims[2])
    bf = uni(keys[9], (output_dim,), hidden_conv_dims[2])
    return w1, b1, convs, wf, bf


def spatial_decoder_ref(z, w1, b1, convs, wf, bf, node_num):
    """Pure-JAX replica of the PyTorch forward (for correctness checking)."""
    B = z.shape[0]
    H = w1.shape[1]
    C = H // node_num
    L = node_num
    h = _leaky(z @ w1 + b1)
    x = h.reshape(B, C, L)                                  # NCL, as in .view()
    for wck, bc in convs:
        K, _, Cout = wck.shape
        xpad = jnp.pad(x, ((0, 0), (0, 0), (2, 2)))
        out = jnp.zeros((B, Cout, L), jnp.float32) + bc[None, :, None]
        for k in range(K):
            out = out + jnp.einsum('co,bcl->bol', wck[k], xpad[:, :, k:k + L])
        x = _leaky(out)
    return jnp.einsum('bcl,co->blo', x, wf) + bf            # transpose(1,2) + Linear


if __name__ == "__main__":
    input_dim, output_dim, node_num = 32, 4, 16
    hidden_dim, hidden_conv_dims = 64, [16, 12, 8]          # channel_dim = 4

    key = jax.random.PRNGKey(0)
    kp, kz1, kz2 = jax.random.split(key, 3)
    w1, b1, convs, wf, bf = init_params(
        kp, input_dim, output_dim, node_num, hidden_dim, hidden_conv_dims)
    arrays, meta = pack_params(w1, b1, convs, wf, bf)

    # B=2: small-shape check; B=130: exercises a 2-step grid + batch padding.
    for B, kz in ((2, kz1), (130, kz2)):
        z = jax.random.normal(kz, (B, input_dim), jnp.float32)
        out = spatial_decoder_pallas(z, arrays, meta, node_num=node_num)
        out = jax.block_until_ready(out)
        ref = spatial_decoder_ref(z, w1, b1, convs, wf, bf, node_num)
        assert out.shape == (B, node_num, output_dim)
        np.testing.assert_allclose(np.asarray(out), np.asarray(ref),
                                   rtol=2e-4, atol=2e-4)
    print("KERNEL_OK")
</pallas_src>

<mosaic_0001>
module attributes {stable_mosaic.version = 11 : i64} {
  func.func @_decoder_kernel(%arg0: i32, %arg1: memref<32x128xf32, #tpu.memory_space<vmem>>, %arg2: memref<64x32xf32, #tpu.memory_space<vmem>>, %arg3: memref<64x1xf32, #tpu.memory_space<vmem>>, %arg4: memref<16x40xf32, #tpu.memory_space<vmem>>, %arg5: memref<16x1xf32, #tpu.memory_space<vmem>>, %arg6: memref<16x80xf32, #tpu.memory_space<vmem>>, %arg7: memref<16x1xf32, #tpu.memory_space<vmem>>, %arg8: memref<8x80xf32, #tpu.memory_space<vmem>>, %arg9: memref<8x1xf32, #tpu.memory_space<vmem>>, %arg10: memref<8x8xf32, #tpu.memory_space<vmem>>, %arg11: memref<8x1xf32, #tpu.memory_space<vmem>>, %arg12: memref<8x2048xf32, #tpu.memory_space<vmem>>, %arg13: memref<8x2560xf32, #tpu.memory_space<vmem>>, %arg14: memref<16x2560xf32, #tpu.memory_space<vmem>>, %arg15: memref<16x2560xf32, #tpu.memory_space<vmem>>, %arg16: memref<80x2048xf32, #tpu.memory_space<vmem>>) attributes {dimension_semantics = [#tpu.dimension_semantics<parallel>], iteration_bounds = array<i64: 1>, scalar_prefetch = 0 : i64, scratch_operands = 4 : i64, tpu.core_type = #tpu.core_type<tc>, window_params = [{transform_indices = @transform_0, window_bounds = array<i64: 32, 128>}, {pipeline_mode = #tpu.pipeline_mode<synchronous>, transform_indices = @transform_1, window_bounds = array<i64: 64, 32>}, {pipeline_mode = #tpu.pipeline_mode<synchronous>, transform_indices = @transform_2, window_bounds = array<i64: 64, 1>}, {pipeline_mode = #tpu.pipeline_mode<synchronous>, transform_indices = @transform_3, window_bounds = array<i64: 16, 40>}, {pipeline_mode = #tpu.pipeline_mode<synchronous>, transform_indices = @transform_4, window_bounds = array<i64: 16, 1>}, {pipeline_mode = #tpu.pipeline_mode<synchronous>, transform_indices = @transform_5, window_bounds = array<i64: 16, 80>}, {pipeline_mode = #tpu.pipeline_mode<synchronous>, transform_indices = @transform_6, window_bounds = array<i64: 16, 1>}, {pipeline_mode = #tpu.pipeline_mode<synchronous>, transform_indices = @transform_7, window_bounds = array<i64: 8, 80>}, {pipeline_mode = #tpu.pipeline_mode<synchronous>, transform_indices = @transform_8, window_bounds = array<i64: 8, 1>}, {pipeline_mode = #tpu.pipeline_mode<synchronous>, transform_indices = @transform_9, window_bounds = array<i64: 8, 8>}, {pipeline_mode = #tpu.pipeline_mode<synchronous>, transform_indices = @transform_10, window_bounds = array<i64: 8, 1>}, {transform_indices = @transform_11, window_bounds = array<i64: 8, 2048>}]} {
    %cst = arith.constant 0.000000e+00 : f32
    %0 = vector.broadcast %cst : f32 to vector<8x256xf32>
    %c0 = arith.constant 0 : index
    %c0_0 = arith.constant 0 : index
    %1 = vector.load %arg13[%c0, %c0_0] : memref<8x2560xf32, #tpu.memory_space<vmem>>, vector<8x256xf32>
    tpu.vector_store %arg13[%c0, %c0_0], %0 {strides = array<i32>} : memref<8x2560xf32, #tpu.memory_space<vmem>>, vector<8x256xf32>,
    %cst_1 = arith.constant 0.000000e+00 : f32
    %2 = vector.broadcast %cst_1 : f32 to vector<8x256xf32>
    %c0_2 = arith.constant 0 : index
    %c2304 = arith.constant 2304 : index
    %3 = vector.load %arg13[%c0_2, %c2304] : memref<8x2560xf32, #tpu.memory_space<vmem>>, vector<8x256xf32>
    tpu.vector_store %arg13[%c0_2, %c2304], %2 {strides = array<i32>} : memref<8x2560xf32, #tpu.memory_space<vmem>>, vector<8x256xf32>,
    %cst_3 = arith.constant 0.000000e+00 : f32
    %4 = vector.broadcast %cst_3 : f32 to vector<16x256xf32>
    %c0_4 = arith.constant 0 : index
    %c0_5 = arith.constant 0 : index
    %5 = vector.load %arg14[%c0_4, %c0_5] : memref<16x2560xf32, #tpu.memory_space<vmem>>, vector<16x256xf32>
    tpu.vector_store %arg14[%c0_4, %c0_5], %4 {strides = array<i32>} : memref<16x2560xf32, #tpu.memory_space<vmem>>, vector<16x256xf32>,
    %cst_6 = arith.constant 0.000000e+00 : f32
    %6 = vector.broadcast %cst_6 : f32 to vector<16x256xf32>
    %c0_7 = arith.constant 0 : index
    %c2304_8 = arith.constant 2304 : index
    %7 = vector.load %arg14[%c0_7, %c2304_8] : memref<16x2560xf32, #tpu.memory_space<vmem>>, vector<16x256xf32>
    tpu.vector_store %arg14[%c0_7, %c2304_8], %6 {strides = array<i32>} : memref<16x2560xf32, #tpu.memory_space<vmem>>, vector<16x256xf32>,
    %cst_9 = arith.constant 0.000000e+00 : f32
    %8 = vector.broadcast %cst_9 : f32 to vector<16x256xf32>
    %c0_10 = arith.constant 0 : index
    %c0_11 = arith.constant 0 : index
    %9 = vector.load %arg15[%c0_10, %c0_11] : memref<16x2560xf32, #tpu.memory_space<vmem>>, vector<16x256xf32>
    tpu.vector_store %arg15[%c0_10, %c0_11], %8 {strides = array<i32>} : memref<16x2560xf32, #tpu.memory_space<vmem>>, vector<16x256xf32>,
    %cst_12 = arith.constant 0.000000e+00 : f32
    %10 = vector.broadcast %cst_12 : f32 to vector<16x256xf32>
    %c0_13 = arith.constant 0 : index
    %c2304_14 = arith.constant 2304 : index
    %11 = vector.load %arg15[%c0_13, %c2304_14] : memref<16x2560xf32, #tpu.memory_space<vmem>>, vector<16x256xf32>
    tpu.vector_store %arg15[%c0_13, %c2304_14], %10 {strides = array<i32>} : memref<16x2560xf32, #tpu.memory_space<vmem>>, vector<16x256xf32>,
    %cst_15 = arith.constant 0.000000e+00 : f32
    %12 = vector.broadcast %cst_15 : f32 to vector<4x2560xf32>
    %c4 = arith.constant 4 : index
    %c0_16 = arith.constant 0 : index
    %13 = vector.load %arg13[%c4, %c0_16] : memref<8x2560xf32, #tpu.memory_space<vmem>>, vector<4x2560xf32>
    tpu.vector_store %arg13[%c4, %c0_16], %12 {strides = array<i32>} : memref<8x2560xf32, #tpu.memory_space<vmem>>, vector<4x2560xf32>,
    %c0_17 = arith.constant 0 : index
    %c0_18 = arith.constant 0 : index
    %14 = vector.load %arg2[%c0_17, %c0_18] : memref<64x32xf32, #tpu.memory_space<vmem>>, vector<64x32xf32>
    %c0_19 = arith.constant 0 : index
    %c0_20 = arith.constant 0 : index
    %15 = vector.load %arg1[%c0_19, %c0_20] : memref<32x128xf32, #tpu.memory_space<vmem>>, vector<32x128xf32>
    %cst_21 = arith.constant dense<0.000000e+00> : vector<64x128xf32>
    %16 = tpu.matmul %14, %15, %cst_21 {dimension_numbers = #tpu.dot_dimension_numbers<[1], [0], [0], [1], [0, 0, 1, 1], [], []>} : vector<64x32xf32>, vector<32x128xf32>, vector<64x128xf32> -> vector<64x128xf32>
    %c0_22 = arith.constant 0 : index
    %c0_23 = arith.constant 0 : index
    %17 = vector.load %arg3[%c0_22, %c0_23] : memref<64x1xf32, #tpu.memory_space<vmem>>, vector<64x1xf32>
    %18 = vector.broadcast %17 : vector<64x1xf32> to vector<64x128xf32>
    %19 = arith.addf %16, %18 : vector<64x128xf32>
    %cst_24 = arith.constant 0.000000e+00 : f32
    %20 = vector.broadcast %cst_24 : f32 to vector<64x128xf32>
    %21 = arith.cmpf oge, %19, %20 : vector<64x128xf32>
    %cst_25 = arith.constant 5.000000e-02 : f32
    %22 = vector.broadcast %cst_25 : f32 to vector<64x128xf32>
    %23 = arith.mulf %22, %19 : vector<64x128xf32>
    %24 = arith.select %21, %19, %23 : vector<64x128xi1>, vector<64x128xf32>
    %25 = vector.extract_strided_slice %24 {offsets = [0, 0], sizes = [1, 128], strides = [1, 1]} : vector<64x128xf32> to vector<1x128xf32>
    %c0_26 = arith.constant 0 : index
    %c256 = arith.constant 256 : index
    %26 = vector.load %arg13[%c0_26, %c256] : memref<8x2560xf32, #tpu.memory_space<vmem>>, vector<1x128xf32>
    tpu.vector_store %arg13[%c0_26, %c256], %25 {strides = array<i32>} : memref<8x2560xf32, #tpu.memory_space<vmem>>, vector<1x128xf32>,
    %27 = vector.extract_strided_slice %24 {offsets = [1, 0], sizes = [1, 128], strides = [1, 1]} : vector<64x128xf32> to vector<1x128xf32>
    %c0_27 = arith.constant 0 : index
    %c384 = arith.constant 384 : index
    %28 = vector.load %arg13[%c0_27, %c384] : memref<8x2560xf32, #tpu.memory_space<vmem>>, vector<1x128xf32>
    tpu.vector_store %arg13[%c0_27, %c384], %27 {strides = array<i32>} : memref<8x2560xf32, #tpu.memory_space<vmem>>, vector<1x128xf32>,
    %29 = vector.extract_strided_slice %24 {offsets = [2, 0], sizes = [1, 128], strides = [1, 1]} : vector<64x128xf32> to vector<1x128xf32>
    %c0_28 = arith.constant 0 : index
    %c512 = arith.constant 512 : index
    %30 = vector.load %arg13[%c0_28, %c512] : memref<8x2560xf32, #tpu.memory_space<vmem>>, vector<1x128xf32>
    tpu.vector_store %arg13[%c0_28, %c512], %29 {strides = array<i32>} : memref<8x2560xf32, #tpu.memory_space<vmem>>, vector<1x128xf32>,
    %31 = vector.extract_strided_slice %24 {offsets = [3, 0], sizes = [1, 128], strides = [1, 1]} : vector<64x128xf32> to vector<1x128xf32>
    %c0_29 = arith.constant 0 : index
    %c640 = arith.constant 640 : index
    %32 = vector.load %arg13[%c0_29, %c640] : memref<8x2560xf32, #tpu.memory_space<vmem>>, vector<1x128xf32>
    tpu.vector_store %arg13[%c0_29, %c640], %31 {strides = array<i32>} : memref<8x2560xf32, #tpu.memory_space<vmem>>, vector<1x128xf32>,
    %33 = vector.extract_strided_slice %24 {offsets = [4, 0], sizes = [1, 128], strides = [1, 1]} : vector<64x128xf32> to vector<1x128xf32>
    %c0_30 = arith.constant 0 : index
    %c768 = arith.constant 768 : index
    %34 = vector.load %arg13[%c0_30, %c768] : memref<8x2560xf32, #tpu.memory_space<vmem>>, vector<1x128xf32>
    tpu.vector_store %arg13[%c0_30, %c768], %33 {strides = array<i32>} : memref<8x2560xf32, #tpu.memory_space<vmem>>, vector<1x128xf32>,
    %35 = vector.extract_strided_slice %24 {offsets = [5, 0], sizes = [1, 128], strides = [1, 1]} : vector<64x128xf32> to vector<1x128xf32>
    %c0_31 = arith.constant 0 : index
    %c896 = arith.constant 896 : index
    %36 = vector.load %arg13[%c0_31, %c896] : memref<8x2560xf32, #tpu.memory_space<vmem>>, vector<1x128xf32>
    tpu.vector_store %arg13[%c0_31, %c896], %35 {strides = array<i32>} : memref<8x2560xf32, #tpu.memory_space<vmem>>, vector<1x128xf32>,
    %37 = vector.extract_strided_slice %24 {offsets = [6, 0], sizes = [1, 128], strides = [1, 1]} : vector<64x128xf32> to vector<1x128xf32>
    %c0_32 = arith.constant 0 : index
    %c1024 = arith.constant 1024 : index
    %38 = vector.load %arg13[%c0_32, %c1024] : memref<8x2560xf32, #tpu.memory_space<vmem>>, vector<1x128xf32>
    tpu.vector_store %arg13[%c0_32, %c1024], %37 {strides = array<i32>} : memref<8x2560xf32, #tpu.memory_space<vmem>>, vector<1x128xf32>,
    %39 = vector.extract_strided_slice %24 {offsets = [7, 0], sizes = [1, 128], strides = [1, 1]} : vector<64x128xf32> to vector<1x128xf32>
    %c0_33 = arith.constant 0 : index
    %c1152 = arith.constant 1152 : index
    %40 = vector.load %arg13[%c0_33, %c1152] : memref<8x2560xf32, #tpu.memory_space<vmem>>, vector<1x128xf32>
    tpu.vector_store %arg13[%c0_33, %c1152], %39 {strides = array<i32>} : memref<8x2560xf32, #tpu.memory_space<vmem>>, vector<1x128xf32>,
    %41 = vector.extract_strided_slice %24 {offsets = [8, 0], sizes = [1, 128], strides = [1, 1]} : vector<64x128xf32> to vector<1x128xf32>
    %c0_34 = arith.constant 0 : index
    %c1280 = arith.constant 1280 : index
    %42 = vector.load %arg13[%c0_34, %c1280] : memref<8x2560xf32, #tpu.memory_space<vmem>>, vector<1x128xf32>
    tpu.vector_store %arg13[%c0_34, %c1280], %41 {strides = array<i32>} : memref<8x2560xf32, #tpu.memory_space<vmem>>, vector<1x128xf32>,
    %43 = vector.extract_strided_slice %24 {offsets = [9, 0], sizes = [1, 128], strides = [1, 1]} : vector<64x128xf32> to vector<1x128xf32>
    %c0_35 = arith.constant 0 : index
    %c1408 = arith.constant 1408 : index
    %44 = vector.load %arg13[%c0_35, %c1408] : memref<8x2560xf32, #tpu.memory_space<vmem>>, vector<1x128xf32>
    tpu.vector_store %arg13[%c0_35, %c1408], %43 {strides = array<i32>} : memref<8x2560xf32, #tpu.memory_space<vmem>>, vector<1x128xf32>,
    %45 = vector.extract_strided_slice %24 {offsets = [10, 0], sizes = [1, 128], strides = [1, 1]} : vector<64x128xf32> to vector<1x128xf32>
    %c0_36 = arith.constant 0 : index
    %c1536 = arith.constant 1536 : index
    %46 = vector.load %arg13[%c0_36, %c1536] : memref<8x2560xf32, #tpu.memory_space<vmem>>, vector<1x128xf32>
    tpu.vector_store %arg13[%c0_36, %c1536], %45 {strides = array<i32>} : memref<8x2560xf32, #tpu.memory_space<vmem>>, vector<1x128xf32>,
    %47 = vector.extract_strided_slice %24 {offsets = [11, 0], sizes = [1, 128], strides = [1, 1]} : vector<64x128xf32> to vector<1x128xf32>
    %c0_37 = arith.constant 0 : index
    %c1664 = arith.constant 1664 : index
    %48 = vector.load %arg13[%c0_37, %c1664] : memref<8x2560xf32, #tpu.memory_space<vmem>>, vector<1x128xf32>
    tpu.vector_store %arg13[%c0_37, %c1664], %47 {strides = array<i32>} : memref<8x2560xf32, #tpu.memory_space<vmem>>, vector<1x128xf32>,
    %49 = vector.extract_strided_slice %24 {offsets = [12, 0], sizes = [1, 128], strides = [1, 1]} : vector<64x128xf32> to vector<1x128xf32>
    %c0_38 = arith.constant 0 : index
    %c1792 = arith.constant 1792 : index
    %50 = vector.load %arg13[%c0_38, %c1792] : memref<8x2560xf32, #tpu.memory_space<vmem>>, vector<1x128xf32>
    tpu.vector_store %arg13[%c0_38, %c1792], %49 {strides = array<i32>} : memref<8x2560xf32, #tpu.memory_space<vmem>>, vector<1x128xf32>,
    %51 = vector.extract_strided_slice %24 {offsets = [13, 0], sizes = [1, 128], strides = [1, 1]} : vector<64x128xf32> to vector<1x128xf32>
    %c0_39 = arith.constant 0 : index
    %c1920 = arith.constant 1920 : index
    %52 = vector.load %arg13[%c0_39, %c1920] : memref<8x2560xf32, #tpu.memory_space<vmem>>, vector<1x128xf32>
    tpu.vector_store %arg13[%c0_39, %c1920], %51 {strides = array<i32>} : memref<8x2560xf32, #tpu.memory_space<vmem>>, vector<1x128xf32>,
    %53 = vector.extract_strided_slice %24 {offsets = [14, 0], sizes = [1, 128], strides = [1, 1]} : vector<64x128xf32> to vector<1x128xf32>
    %c0_40 = arith.constant 0 : index
    %c2048 = arith.constant 2048 : index
    %54 = vector.load %arg13[%c0_40, %c2048] : memref<8x2560xf32, #tpu.memory_space<vmem>>, vector<1x128xf32>
    tpu.vector_store %arg13[%c0_40, %c2048], %53 {strides = array<i32>} : memref<8x2560xf32, #tpu.memory_space<vmem>>, vector<1x128xf32>,
    %55 = vector.extract_strided_slice %24 {offsets = [15, 0], sizes = [1, 128], strides = [1, 1]} : vector<64x128xf32> to vector<1x128xf32>
    %c0_41 = arith.constant 0 : index
    %c2176 = arith.constant 2176 : index
    %56 = vector.load %arg13[%c0_41, %c2176] : memref<8x2560xf32, #tpu.memory_space<vmem>>, vector<1x128xf32>
    tpu.vector_store %arg13[%c0_41, %c2176], %55 {strides = array<i32>} : memref<8x2560xf32, #tpu.memory_space<vmem>>, vector<1x128xf32>,
    %57 = vector.extract_strided_slice %24 {offsets = [16, 0], sizes = [1, 128], strides = [1, 1]} : vector<64x128xf32> to vector<1x128xf32>
    %c1 = arith.constant 1 : index
    %c256_42 = arith.constant 256 : index
    %58 = vector.load %arg13[%c1, %c256_42] : memref<8x2560xf32, #tpu.memory_space<vmem>>, vector<1x128xf32>
    tpu.vector_store %arg13[%c1, %c256_42], %57 {strides = array<i32>} : memref<8x2560xf32, #tpu.memory_space<vmem>>, vector<1x128xf32>,
    %59 = vector.extract_strided_slice %24 {offsets = [17, 0], sizes = [1, 128], strides = [1, 1]} : vector<64x128xf32> to vector<1x128xf32>
    %c1_43 = arith.constant 1 : index
    %c384_44 = arith.constant 384 : index
    %60 = vector.load %arg13[%c1_43, %c384_44] : memref<8x2560xf32, #tpu.memory_space<vmem>>, vector<1x128xf32>
    tpu.vector_store %arg13[%c1_43, %c384_44], %59 {strides = array<i32>} : memref<8x2560xf32, #tpu.memory_space<vmem>>, vector<1x128xf32>,
    %61 = vector.extract_strided_slice %24 {offsets = [18, 0], sizes = [1, 128], strides = [1, 1]} : vector<64x128xf32> to vector<1x128xf32>
    %c1_45 = arith.constant 1 : index
    %c512_46 = arith.constant 512 : index
    %62 = vector.load %arg13[%c1_45, %c512_46] : memref<8x2560xf32, #tpu.memory_space<vmem>>, vector<1x128xf32>
    tpu.vector_store %arg13[%c1_45, %c512_46], %61 {strides = array<i32>} : memref<8x2560xf32, #tpu.memory_space<vmem>>, vector<1x128xf32>,
    %63 = vector.extract_strided_slice %24 {offsets = [19, 0], sizes = [1, 128], strides = [1, 1]} : vector<64x128xf32> to vector<1x128xf32>
    %c1_47 = arith.constant 1 : index
    %c640_48 = arith.constant 640 : index
    %64 = vector.load %arg13[%c1_47, %c640_48] : memref<8x2560xf32, #tpu.memory_space<vmem>>, vector<1x128xf32>
    tpu.vector_store %arg13[%c1_47, %c640_48], %63 {strides = array<i32>} : memref<8x2560xf32, #tpu.memory_space<vmem>>, vector<1x128xf32>,
    %65 = vector.extract_strided_slice %24 {offsets = [20, 0], sizes = [1, 128], strides = [1, 1]} : vector<64x128xf32> to vector<1x128xf32>
    %c1_49 = arith.constant 1 : index
    %c768_50 = arith.constant 768 : index
    %66 = vector.load %arg13[%c1_49, %c768_50] : memref<8x2560xf32, #tpu.memory_space<vmem>>, vector<1x128xf32>
    tpu.vector_store %arg13[%c1_49, %c768_50], %65 {strides = array<i32>} : memref<8x2560xf32, #tpu.memory_space<vmem>>, vector<1x128xf32>,
    %67 = vector.extract_strided_slice %24 {offsets = [21, 0], sizes = [1, 128], strides = [1, 1]} : vector<64x128xf32> to vector<1x128xf32>
    %c1_51 = arith.constant 1 : index
    %c896_52 = arith.constant 896 : index
    %68 = vector.load %arg13[%c1_51, %c896_52] : memref<8x2560xf32, #tpu.memory_space<vmem>>, vector<1x128xf32>
    tpu.vector_store %arg13[%c1_51, %c896_52], %67 {strides = array<i32>} : memref<8x2560xf32, #tpu.memory_space<vmem>>, vector<1x128xf32>,
    %69 = vector.extract_strided_slice %24 {offsets = [22, 0], sizes = [1, 128], strides = [1, 1]} : vector<64x128xf32> to vector<1x128xf32>
    %c1_53 = arith.constant 1 : index
    %c1024_54 = arith.constant 1024 : index
    %70 = vector.load %arg13[%c1_53, %c1024_54] : memref<8x2560xf32, #tpu.memory_space<vmem>>, vector<1x128xf32>
    tpu.vector_store %arg13[%c1_53, %c1024_54], %69 {strides = array<i32>} : memref<8x2560xf32, #tpu.memory_space<vmem>>, vector<1x128xf32>,
    %71 = vector.extract_strided_slice %24 {offsets = [23, 0], sizes = [1, 128], strides = [1, 1]} : vector<64x128xf32> to vector<1x128xf32>
    %c1_55 = arith.constant 1 : index
    %c1152_56 = arith.constant 1152 : index
    %72 = vector.load %arg13[%c1_55, %c1152_56] : memref<8x2560xf32, #tpu.memory_space<vmem>>, vector<1x128xf32>
    tpu.vector_store %arg13[%c1_55, %c1152_56], %71 {strides = array<i32>} : memref<8x2560xf32, #tpu.memory_space<vmem>>, vector<1x128xf32>,
    %73 = vector.extract_strided_slice %24 {offsets = [24, 0], sizes = [1, 128], strides = [1, 1]} : vector<64x128xf32> to vector<1x128xf32>
    %c1_57 = arith.constant 1 : index
    %c1280_58 = arith.constant 1280 : index
    %74 = vector.load %arg13[%c1_57, %c1280_58] : memref<8x2560xf32, #tpu.memory_space<vmem>>, vector<1x128xf32>
    tpu.vector_store %arg13[%c1_57, %c1280_58], %73 {strides = array<i32>} : memref<8x2560xf32, #tpu.memory_space<vmem>>, vector<1x128xf32>,
    %75 = vector.extract_strided_slice %24 {offsets = [25, 0], sizes = [1, 128], strides = [1, 1]} : vector<64x128xf32> to vector<1x128xf32>
    %c1_59 = arith.constant 1 : index
    %c1408_60 = arith.constant 1408 : index
    %76 = vector.load %arg13[%c1_59, %c1408_60] : memref<8x2560xf32, #tpu.memory_space<vmem>>, vector<1x128xf32>
    tpu.vector_store %arg13[%c1_59, %c1408_60], %75 {strides = array<i32>} : memref<8x2560xf32, #tpu.memory_space<vmem>>, vector<1x128xf32>,
    %77 = vector.extract_strided_slice %24 {offsets = [26, 0], sizes = [1, 128], strides = [1, 1]} : vector<64x128xf32> to vector<1x128xf32>
    %c1_61 = arith.constant 1 : index
    %c1536_62 = arith.constant 1536 : index
    %78 = vector.load %arg13[%c1_61, %c1536_62] : memref<8x2560xf32, #tpu.memory_space<vmem>>, vector<1x128xf32>
    tpu.vector_store %arg13[%c1_61, %c1536_62], %77 {strides = array<i32>} : memref<8x2560xf32, #tpu.memory_space<vmem>>, vector<1x128xf32>,
    %79 = vector.extract_strided_slice %24 {offsets = [27, 0], sizes = [1, 128], strides = [1, 1]} : vector<64x128xf32> to vector<1x128xf32>
    %c1_63 = arith.constant 1 : index
    %c1664_64 = arith.constant 1664 : index
    %80 = vector.load %arg13[%c1_63, %c1664_64] : memref<8x2560xf32, #tpu.memory_space<vmem>>, vector<1x128xf32>
    tpu.vector_store %arg13[%c1_63, %c1664_64], %79 {strides = array<i32>} : memref<8x2560xf32, #tpu.memory_space<vmem>>, vector<1x128xf32>,
    %81 = vector.extract_strided_slice %24 {offsets = [28, 0], sizes = [1, 128], strides = [1, 1]} : vector<64x128xf32> to vector<1x128xf32>
    %c1_65 = arith.constant 1 : index
    %c1792_66 = arith.constant 1792 : index
    %82 = vector.load %arg13[%c1_65, %c1792_66] : memref<8x2560xf32, #tpu.memory_space<vmem>>, vector<1x128xf32>
    tpu.vector_store %arg13[%c1_65, %c1792_66], %81 {strides = array<i32>} : memref<8x2560xf32, #tpu.memory_space<vmem>>, vector<1x128xf32>,
    %83 = vector.extract_strided_slice %24 {offsets = [29, 0], sizes = [1, 128], strides = [1, 1]} : vector<64x128xf32> to vector<1x128xf32>
    %c1_67 = arith.constant 1 : index
    %c1920_68 = arith.constant 1920 : index
    %84 = vector.load %arg13[%c1_67, %c1920_68] : memref<8x2560xf32, #tpu.memory_space<vmem>>, vector<1x128xf32>
    tpu.vector_store %arg13[%c1_67, %c1920_68], %83 {strides = array<i32>} : memref<8x2560xf32, #tpu.memory_space<vmem>>, vector<1x128xf32>,
    %85 = vector.extract_strided_slice %24 {offsets = [30, 0], sizes = [1, 128], strides = [1, 1]} : vector<64x128xf32> to vector<1x128xf32>
    %c1_69 = arith.constant 1 : index
    %c2048_70 = arith.constant 2048 : index
    %86 = vector.load %arg13[%c1_69, %c2048_70] : memref<8x2560xf32, #tpu.memory_space<vmem>>, vector<1x128xf32>
    tpu.vector_store %arg13[%c1_69, %c2048_70], %85 {strides = array<i32>} : memref<8x2560xf32, #tpu.memory_space<vmem>>, vector<1x128xf32>,
    %87 = vector.extract_strided_slice %24 {offsets = [31, 0], sizes = [1, 128], strides = [1, 1]} : vector<64x128xf32> to vector<1x128xf32>
    %c1_71 = arith.constant 1 : index
    %c2176_72 = arith.constant 2176 : index
    %88 = vector.load %arg13[%c1_71, %c2176_72] : memref<8x2560xf32, #tpu.memory_space<vmem>>, vector<1x128xf32>
    tpu.vector_store %arg13[%c1_71, %c2176_72], %87 {strides = array<i32>} : memref<8x2560xf32, #tpu.memory_space<vmem>>, vector<1x128xf32>,
    %89 = vector.extract_strided_slice %24 {offsets = [32, 0], sizes = [1, 128], strides = [1, 1]} : vector<64x128xf32> to vector<1x128xf32>
    %c2 = arith.constant 2 : index
    %c256_73 = arith.constant 256 : index
    %90 = vector.load %arg13[%c2, %c256_73] : memref<8x2560xf32, #tpu.memory_space<vmem>>, vector<1x128xf32>
    tpu.vector_store %arg13[%c2, %c256_73], %89 {strides = array<i32>} : memref<8x2560xf32, #tpu.memory_space<vmem>>, vector<1x128xf32>,
    %91 = vector.extract_strided_slice %24 {offsets = [33, 0], sizes = [1, 128], strides = [1, 1]} : vector<64x128xf32> to vector<1x128xf32>
    %c2_74 = arith.constant 2 : index
    %c384_75 = arith.constant 384 : index
    %92 = vector.load %arg13[%c2_74, %c384_75] : memref<8x2560xf32, #tpu.memory_space<vmem>>, vector<1x128xf32>
    tpu.vector_store %arg13[%c2_74, %c384_75], %91 {strides = array<i32>} : memref<8x2560xf32, #tpu.memory_space<vmem>>, vector<1x128xf32>,
    %93 = vector.extract_strided_slice %24 {offsets = [34, 0], sizes = [1, 128], strides = [1, 1]} : vector<64x128xf32> to vector<1x128xf32>
    %c2_76 = arith.constant 2 : index
    %c512_77 = arith.constant 512 : index
    %94 = vector.load %arg13[%c2_76, %c512_77] : memref<8x2560xf32, #tpu.memory_space<vmem>>, vector<1x128xf32>
    tpu.vector_store %arg13[%c2_76, %c512_77], %93 {strides = array<i32>} : memref<8x2560xf32, #tpu.memory_space<vmem>>, vector<1x128xf32>,
    %95 = vector.extract_strided_slice %24 {offsets = [35, 0], sizes = [1, 128], strides = [1, 1]} : vector<64x128xf32> to vector<1x128xf32>
    %c2_78 = arith.constant 2 : index
    %c640_79 = arith.constant 640 : index
    %96 = vector.load %arg13[%c2_78, %c640_79] : memref<8x2560xf32, #tpu.memory_space<vmem>>, vector<1x128xf32>
    tpu.vector_store %arg13[%c2_78, %c640_79], %95 {strides = array<i32>} : memref<8x2560xf32, #tpu.memory_space<vmem>>, vector<1x128xf32>,
    %97 = vector.extract_strided_slice %24 {offsets = [36, 0], sizes = [1, 128], strides = [1, 1]} : vector<64x128xf32> to vector<1x128xf32>
    %c2_80 = arith.constant 2 : index
    %c768_81 = arith.constant 768 : index
    %98 = vector.load %arg13[%c2_80, %c768_81] : memref<8x2560xf32, #tpu.memory_space<vmem>>, vector<1x128xf32>
    tpu.vector_store %arg13[%c2_80, %c768_81], %97 {strides = array<i32>} : memref<8x2560xf32, #tpu.memory_space<vmem>>, vector<1x128xf32>,
    %99 = vector.extract_strided_slice %24 {offsets = [37, 0], sizes = [1, 128], strides = [1, 1]} : vector<64x128xf32> to vector<1x128xf32>
    %c2_82 = arith.constant 2 : index
    %c896_83 = arith.constant 896 : index
    %100 = vector.load %arg13[%c2_82, %c896_83] : memref<8x2560xf32, #tpu.memory_space<vmem>>, vector<1x128xf32>
    tpu.vector_store %arg13[%c2_82, %c896_83], %99 {strides = array<i32>} : memref<8x2560xf32, #tpu.memory_space<vmem>>, vector<1x128xf32>,
    %101 = vector.extract_strided_slice %24 {offsets = [38, 0], sizes = [1, 128], strides = [1, 1]} : vector<64x128xf32> to vector<1x128xf32>
    %c2_84 = arith.constant 2 : index
    %c1024_85 = arith.constant 1024 : index
    %102 = vector.load %arg13[%c2_84, %c1024_85] : memref<8x2560xf32, #tpu.memory_space<vmem>>, vector<1x128xf32>
    tpu.vector_store %arg13[%c2_84, %c1024_85], %101 {strides = array<i32>} : memref<8x2560xf32, #tpu.memory_space<vmem>>, vector<1x128xf32>,
    %103 = vector.extract_strided_slice %24 {offsets = [39, 0], sizes = [1, 128], strides = [1, 1]} : vector<64x128xf32> to vector<1x128xf32>
    %c2_86 = arith.constant 2 : index
    %c1152_87 = arith.constant 1152 : index
    %104 = vector.load %arg13[%c2_86, %c1152_87] : memref<8x2560xf32, #tpu.memory_space<vmem>>, vector<1x128xf32>
    tpu.vector_store %arg13[%c2_86, %c1152_87], %103 {strides = array<i32>} : memref<8x2560xf32, #tpu.memory_space<vmem>>, vector<1x128xf32>,
    %105 = vector.extract_strided_slice %24 {offsets = [40, 0], sizes = [1, 128], strides = [1, 1]} : vector<64x128xf32> to vector<1x128xf32>
    %c2_88 = arith.constant 2 : index
    %c1280_89 = arith.constant 1280 : index
    %106 = vector.load %arg13[%c2_88, %c1280_89] : memref<8x2560xf32, #tpu.memory_space<vmem>>, vector<1x128xf32>
    tpu.vector_store %arg13[%c2_88, %c1280_89], %105 {strides = array<i32>} : memref<8x2560xf32, #tpu.memory_space<vmem>>, vector<1x128xf32>,
    %107 = vector.extract_strided_slice %24 {offsets = [41, 0], sizes = [1, 128], strides = [1, 1]} : vector<64x128xf32> to vector<1x128xf32>
    %c2_90 = arith.constant 2 : index
    %c1408_91 = arith.constant 1408 : index
    %108 = vector.load %arg13[%c2_90, %c1408_91] : memref<8x2560xf32, #tpu.memory_space<vmem>>, vector<1x128xf32>
    tpu.vector_store %arg13[%c2_90, %c1408_91], %107 {strides = array<i32>} : memref<8x2560xf32, #tpu.memory_space<vmem>>, vector<1x128xf32>,
    %109 = vector.extract_strided_slice %24 {offsets = [42, 0], sizes = [1, 128], strides = [1, 1]} : vector<64x128xf32> to vector<1x128xf32>
    %c2_92 = arith.constant 2 : index
    %c1536_93 = arith.constant 1536 : index
    %110 = vector.load %arg13[%c2_92, %c1536_93] : memref<8x2560xf32, #tpu.memory_space<vmem>>, vector<1x128xf32>
    tpu.vector_store %arg13[%c2_92, %c1536_93], %109 {strides = array<i32>} : memref<8x2560xf32, #tpu.memory_space<vmem>>, vector<1x128xf32>,
    %111 = vector.extract_strided_slice %24 {offsets = [43, 0], sizes = [1, 128], strides = [1, 1]} : vector<64x128xf32> to vector<1x128xf32>
    %c2_94 = arith.constant 2 : index
    %c1664_95 = arith.constant 1664 : index
    %112 = vector.load %arg13[%c2_94, %c1664_95] : memref<8x2560xf32, #tpu.memory_space<vmem>>, vector<1x128xf32>
    tpu.vector_store %arg13[%c2_94, %c1664_95], %111 {strides = array<i32>} : memref<8x2560xf32, #tpu.memory_space<vmem>>, vector<1x128xf32>,
    %113 = vector.extract_strided_slice %24 {offsets = [44, 0], sizes = [1, 128], strides = [1, 1]} : vector<64x128xf32> to vector<1x128xf32>
    %c2_96 = arith.constant 2 : index
    %c1792_97 = arith.constant 1792 : index
    %114 = vector.load %arg13[%c2_96, %c1792_97] : memref<8x2560xf32, #tpu.memory_space<vmem>>, vector<1x128xf32>
    tpu.vector_store %arg13[%c2_96, %c1792_97], %113 {strides = array<i32>} : memref<8x2560xf32, #tpu.memory_space<vmem>>, vector<1x128xf32>,
    %115 = vector.extract_strided_slice %24 {offsets = [45, 0], sizes = [1, 128], strides = [1, 1]} : vector<64x128xf32> to vector<1x128xf32>
    %c2_98 = arith.constant 2 : index
    %c1920_99 = arith.constant 1920 : index
    %116 = vector.load %arg13[%c2_98, %c1920_99] : memref<8x2560xf32, #tpu.memory_space<vmem>>, vector<1x128xf32>
    tpu.vector_store %arg13[%c2_98, %c1920_99], %115 {strides = array<i32>} : memref<8x2560xf32, #tpu.memory_space<vmem>>, vector<1x128xf32>,
    %117 = vector.extract_strided_slice %24 {offsets = [46, 0], sizes = [1, 128], strides = [1, 1]} : vector<64x128xf32> to vector<1x128xf32>
    %c2_100 = arith.constant 2 : index
    %c2048_101 = arith.constant 2048 : index
    %118 = vector.load %arg13[%c2_100, %c2048_101] : memref<8x2560xf32, #tpu.memory_space<vmem>>, vector<1x128xf32>
    tpu.vector_store %arg13[%c2_100, %c2048_101], %117 {strides = array<i32>} : memref<8x2560xf32, #tpu.memory_space<vmem>>, vector<1x128xf32>,
    %119 = vector.extract_strided_slice %24 {offsets = [47, 0], sizes = [1, 128], strides = [1, 1]} : vector<64x128xf32> to vector<1x128xf32>
    %c2_102 = arith.constant 2 : index
    %c2176_103 = arith.constant 2176 : index
    %120 = vector.load %arg13[%c2_102, %c2176_103] : memref<8x2560xf32, #tpu.memory_space<vmem>>, vector<1x128xf32>
    tpu.vector_store %arg13[%c2_102, %c2176_103], %119 {strides = array<i32>} : memref<8x2560xf32, #tpu.memory_space<vmem>>, vector<1x128xf32>,
    %121 = vector.extract_strided_slice %24 {offsets = [48, 0], sizes = [1, 128], strides = [1, 1]} : vector<64x128xf32> to vector<1x128xf32>
    %c3 = arith.constant 3 : index
    %c256_104 = arith.constant 256 : index
    %122 = vector.load %arg13[%c3, %c256_104] : memref<8x2560xf32, #tpu.memory_space<vmem>>, vector<1x128xf32>
    tpu.vector_store %arg13[%c3, %c256_104], %121 {strides = array<i32>} : memref<8x2560xf32, #tpu.memory_space<vmem>>, vector<1x128xf32>,
    %123 = vector.extract_strided_slice %24 {offsets = [49, 0], sizes = [1, 128], strides = [1, 1]} : vector<64x128xf32> to vector<1x128xf32>
    %c3_105 = arith.constant 3 : index
    %c384_106 = arith.constant 384 : index
    %124 = vector.load %arg13[%c3_105, %c384_106] : memref<8x2560xf32, #tpu.memory_space<vmem>>, vector<1x128xf32>
    tpu.vector_store %arg13[%c3_105, %c384_106], %123 {strides = array<i32>} : memref<8x2560xf32, #tpu.memory_space<vmem>>, vector<1x128xf32>,
    %125 = vector.extract_strided_slice %24 {offsets = [50, 0], sizes = [1, 128], strides = [1, 1]} : vector<64x128xf32> to vector<1x128xf32>
    %c3_107 = arith.constant 3 : index
    %c512_108 = arith.constant 512 : index
    %126 = vector.load %arg13[%c3_107, %c512_108] : memref<8x2560xf32, #tpu.memory_space<vmem>>, vector<1x128xf32>
    tpu.vector_store %arg13[%c3_107, %c512_108], %125 {strides = array<i32>} : memref<8x2560xf32, #tpu.memory_space<vmem>>, vector<1x128xf32>,
    %127 = vector.extract_strided_slice %24 {offsets = [51, 0], sizes = [1, 128], strides = [1, 1]} : vector<64x128xf32> to vector<1x128xf32>
    %c3_109 = arith.constant 3 : index
    %c640_110 = arith.constant 640 : index
    %128 = vector.load %arg13[%c3_109, %c640_110] : memref<8x2560xf32, #tpu.memory_space<vmem>>, vector<1x128xf32>
    tpu.vector_store %arg13[%c3_109, %c640_110], %127 {strides = array<i32>} : memref<8x2560xf32, #tpu.memory_space<vmem>>, vector<1x128xf32>,
    %129 = vector.extract_strided_slice %24 {offsets = [52, 0], sizes = [1, 128], strides = [1, 1]} : vector<64x128xf32> to vector<1x128xf32>
    %c3_111 = arith.constant 3 : index
    %c768_112 = arith.constant 768 : index
    %130 = vector.load %arg13[%c3_111, %c768_112] : memref<8x2560xf32, #tpu.memory_space<vmem>>, vector<1x128xf32>
    tpu.vector_store %arg13[%c3_111, %c768_112], %129 {strides = array<i32>} : memref<8x2560xf32, #tpu.memory_space<vmem>>, vector<1x128xf32>,
    %131 = vector.extract_strided_slice %24 {offsets = [53, 0], sizes = [1, 128], strides = [1, 1]} : vector<64x128xf32> to vector<1x128xf32>
    %c3_113 = arith.constant 3 : index
    %c896_114 = arith.constant 896 : index
    %132 = vector.load %arg13[%c3_113, %c896_114] : memref<8x2560xf32, #tpu.memory_space<vmem>>, vector<1x128xf32>
    tpu.vector_store %arg13[%c3_113, %c896_114], %131 {strides = array<i32>} : memref<8x2560xf32, #tpu.memory_space<vmem>>, vector<1x128xf32>,
    %133 = vector.extract_strided_slice %24 {offsets = [54, 0], sizes = [1, 128], strides = [1, 1]} : vector<64x128xf32> to vector<1x128xf32>
    %c3_115 = arith.constant 3 : index
    %c1024_116 = arith.constant 1024 : index
    %134 = vector.load %arg13[%c3_115, %c1024_116] : memref<8x2560xf32, #tpu.memory_space<vmem>>, vector<1x128xf32>
    tpu.vector_store %arg13[%c3_115, %c1024_116], %133 {strides = array<i32>} : memref<8x2560xf32, #tpu.memory_space<vmem>>, vector<1x128xf32>,
    %135 = vector.extract_strided_slice %24 {offsets = [55, 0], sizes = [1, 128], strides = [1, 1]} : vector<64x128xf32> to vector<1x128xf32>
    %c3_117 = arith.constant 3 : index
    %c1152_118 = arith.constant 1152 : index
    %136 = vector.load %arg13[%c3_117, %c1152_118] : memref<8x2560xf32, #tpu.memory_space<vmem>>, vector<1x128xf32>
    tpu.vector_store %arg13[%c3_117, %c1152_118], %135 {strides = array<i32>} : memref<8x2560xf32, #tpu.memory_space<vmem>>, vector<1x128xf32>,
    %137 = vector.extract_strided_slice %24 {offsets = [56, 0], sizes = [1, 128], strides = [1, 1]} : vector<64x128xf32> to vector<1x128xf32>
    %c3_119 = arith.constant 3 : index
    %c1280_120 = arith.constant 1280 : index
    %138 = vector.load %arg13[%c3_119, %c1280_120] : memref<8x2560xf32, #tpu.memory_space<vmem>>, vector<1x128xf32>
    tpu.vector_store %arg13[%c3_119, %c1280_120], %137 {strides = array<i32>} : memref<8x2560xf32, #tpu.memory_space<vmem>>, vector<1x128xf32>,
    %139 = vector.extract_strided_slice %24 {offsets = [57, 0], sizes = [1, 128], strides = [1, 1]} : vector<64x128xf32> to vector<1x128xf32>
    %c3_121 = arith.constant 3 : index
    %c1408_122 = arith.constant 1408 : index
    %140 = vector.load %arg13[%c3_121, %c1408_122] : memref<8x2560xf32, #tpu.memory_space<vmem>>, vector<1x128xf32>
    tpu.vector_store %arg13[%c3_121, %c1408_122], %139 {strides = array<i32>} : memref<8x2560xf32, #tpu.memory_space<vmem>>, vector<1x128xf32>,
    %141 = vector.extract_strided_slice %24 {offsets = [58, 0], sizes = [1, 128], strides = [1, 1]} : vector<64x128xf32> to vector<1x128xf32>
    %c3_123 = arith.constant 3 : index
    %c1536_124 = arith.constant 1536 : index
    %142 = vector.load %arg13[%c3_123, %c1536_124] : memref<8x2560xf32, #tpu.memory_space<vmem>>, vector<1x128xf32>
    tpu.vector_store %arg13[%c3_123, %c1536_124], %141 {strides = array<i32>} : memref<8x2560xf32, #tpu.memory_space<vmem>>, vector<1x128xf32>,
    %143 = vector.extract_strided_slice %24 {offsets = [59, 0], sizes = [1, 128], strides = [1, 1]} : vector<64x128xf32> to vector<1x128xf32>
    %c3_125 = arith.constant 3 : index
    %c1664_126 = arith.constant 1664 : index
    %144 = vector.load %arg13[%c3_125, %c1664_126] : memref<8x2560xf32, #tpu.memory_space<vmem>>, vector<1x128xf32>
    tpu.vector_store %arg13[%c3_125, %c1664_126], %143 {strides = array<i32>} : memref<8x2560xf32, #tpu.memory_space<vmem>>, vector<1x128xf32>,
    %145 = vector.extract_strided_slice %24 {offsets = [60, 0], sizes = [1, 128], strides = [1, 1]} : vector<64x128xf32> to vector<1x128xf32>
    %c3_127 = arith.constant 3 : index
    %c1792_128 = arith.constant 1792 : index
    %146 = vector.load %arg13[%c3_127, %c1792_128] : memref<8x2560xf32, #tpu.memory_space<vmem>>, vector<1x128xf32>
    tpu.vector_store %arg13[%c3_127, %c1792_128], %145 {strides = array<i32>} : memref<8x2560xf32, #tpu.memory_space<vmem>>, vector<1x128xf32>,
    %147 = vector.extract_strided_slice %24 {offsets = [61, 0], sizes = [1, 128], strides = [1, 1]} : vector<64x128xf32> to vector<1x128xf32>
    %c3_129 = arith.constant 3 : index
    %c1920_130 = arith.constant 1920 : index
    %148 = vector.load %arg13[%c3_129, %c1920_130] : memref<8x2560xf32, #tpu.memory_space<vmem>>, vector<1x128xf32>
    tpu.vector_store %arg13[%c3_129, %c1920_130], %147 {strides = array<i32>} : memref<8x2560xf32, #tpu.memory_space<vmem>>, vector<1x128xf32>,
    %149 = vector.extract_strided_slice %24 {offsets = [62, 0], sizes = [1, 128], strides = [1, 1]} : vector<64x128xf32> to vector<1x128xf32>
    %c3_131 = arith.constant 3 : index
    %c2048_132 = arith.constant 2048 : index
    %150 = vector.load %arg13[%c3_131, %c2048_132] : memref<8x2560xf32, #tpu.memory_space<vmem>>, vector<1x128xf32>
    tpu.vector_store %arg13[%c3_131, %c2048_132], %149 {strides = array<i32>} : memref<8x2560xf32, #tpu.memory_space<vmem>>, vector<1x128xf32>,
    %151 = vector.extract_strided_slice %24 {offsets = [63, 0], sizes = [1, 128], strides = [1, 1]} : vector<64x128xf32> to vector<1x128xf32>
    %c3_133 = arith.constant 3 : index
    %c2176_134 = arith.constant 2176 : index
    %152 = vector.load %arg13[%c3_133, %c2176_134] : memref<8x2560xf32, #tpu.memory_space<vmem>>, vector<1x128xf32>
    tpu.vector_store %arg13[%c3_133, %c2176_134], %151 {strides = array<i32>} : memref<8x2560xf32, #tpu.memory_space<vmem>>, vector<1x128xf32>,
    %c0_135 = arith.constant 0 : index
    %c0_136 = arith.constant 0 : index
    %153 = vector.load %arg13[%c0_135, %c0_136] : memref<8x2560xf32, #tpu.memory_space<vmem>>, vector<8x2048xf32>
    %c0_137 = arith.constant 0 : index
    %c0_138 = arith.constant 0 : index
    %154 = vector.load %arg16[%c0_137, %c0_138] : memref<80x2048xf32, #tpu.memory_space<vmem>>, vector<8x2048xf32>
    tpu.vector_store %arg16[%c0_137, %c0_138], %153 {strides = array<i32>} : memref<80x2048xf32, #tpu.memory_space<vmem>>, vector<8x2048xf32>,
    %c0_139 = arith.constant 0 : index
    %c128 = arith.constant 128 : index
    %155 = vector.load %arg13[%c0_139, %c128] : memref<8x2560xf32, #tpu.memory_space<vmem>>, vector<8x2048xf32>
    %c8 = arith.constant 8 : index
    %c0_140 = arith.constant 0 : index
    %156 = vector.load %arg16[%c8, %c0_140] : memref<80x2048xf32, #tpu.memory_space<vmem>>, vector<8x2048xf32>
    tpu.vector_store %arg16[%c8, %c0_140], %155 {strides = array<i32>} : memref<80x2048xf32, #tpu.memory_space<vmem>>, vector<8x2048xf32>,
    %c0_141 = arith.constant 0 : index
    %c256_142 = arith.constant 256 : index
    %157 = vector.load %arg13[%c0_141, %c256_142] : memref<8x2560xf32, #tpu.memory_space<vmem>>, vector<8x2048xf32>
    %c16 = arith.constant 16 : index
    %c0_143 = arith.constant 0 : index
    %158 = vector.load %arg16[%c16, %c0_143] : memref<80x2048xf32, #tpu.memory_space<vmem>>, vector<8x2048xf32>
    tpu.vector_store %arg16[%c16, %c0_143], %157 {strides = array<i32>} : memref<80x2048xf32, #tpu.memory_space<vmem>>, vector<8x2048xf32>,
    %c0_144 = arith.constant 0 : index
    %c384_145 = arith.constant 384 : index
    %159 = vector.load %arg13[%c0_144, %c384_145] : memref<8x2560xf32, #tpu.memory_space<vmem>>, vector<8x2048xf32>
    %c24 = arith.constant 24 : index
    %c0_146 = arith.constant 0 : index
    %160 = vector.load %arg16[%c24, %c0_146] : memref<80x2048xf32, #tpu.memory_space<vmem>>, vector<8x2048xf32>
    tpu.vector_store %arg16[%c24, %c0_146], %159 {strides = array<i32>} : memref<80x2048xf32, #tpu.memory_space<vmem>>, vector<8x2048xf32>,
    %c0_147 = arith.constant 0 : index
    %c512_148 = arith.constant 512 : index
    %161 = vector.load %arg13[%c0_147, %c512_148] : memref<8x2560xf32, #tpu.memory_space<vmem>>, vector<8x2048xf32>
    %c32 = arith.constant 32 : index
    %c0_149 = arith.constant 0 : index
    %162 = vector.load %arg16[%c32, %c0_149] : memref<80x2048xf32, #tpu.memory_space<vmem>>, vector<8x2048xf32>
    tpu.vector_store %arg16[%c32, %c0_149], %161 {strides = array<i32>} : memref<80x2048xf32, #tpu.memory_space<vmem>>, vector<8x2048xf32>,
    %c0_150 = arith.constant 0 : index
    %c0_151 = arith.constant 0 : index
    %163 = vector.load %arg4[%c0_150, %c0_151] : memref<16x40xf32, #tpu.memory_space<vmem>>, vector<16x40xf32>
    %c0_152 = arith.constant 0 : index
    %c0_153 = arith.constant 0 : index
    %164 = vector.load %arg16[%c0_152, %c0_153] : memref<80x2048xf32, #tpu.memory_space<vmem>>, vector<40x2048xf32>
    %cst_154 = arith.constant dense<0.000000e+00> : vector<16x2048xf32>
    %165 = tpu.matmul %163, %164, %cst_154 {dimension_numbers = #tpu.dot_dimension_numbers<[1], [0], [0], [1], [0, 0, 1, 1], [], []>} : vector<16x40xf32>, vector<40x2048xf32>, vector<16x2048xf32> -> vector<16x2048xf32>
    %c0_155 = arith.constant 0 : index
    %c0_156 = arith.constant 0 : index
    %166 = vector.load %arg5[%c0_155, %c0_156] : memref<16x1xf32, #tpu.memory_space<vmem>>, vector<16x1xf32>
    %167 = vector.broadcast %166 : vector<16x1xf32> to vector<16x2048xf32>
    %168 = arith.addf %165, %167 : vector<16x2048xf32>
    %cst_157 = arith.constant 0.000000e+00 : f32
    %169 = vector.broadcast %cst_157 : f32 to vector<16x2048xf32>
    %170 = arith.cmpf oge, %168, %169 : vector<16x2048xf32>
    %cst_158 = arith.constant 5.000000e-02 : f32
    %171 = vector.broadcast %cst_158 : f32 to vector<16x2048xf32>
    %172 = arith.mulf %171, %168 : vector<16x2048xf32>
    %173 = arith.select %170, %168, %172 : vector<16x2048xi1>, vector<16x2048xf32>
    %c0_159 = arith.constant 0 : index
    %c256_160 = arith.constant 256 : index
    %174 = vector.load %arg14[%c0_159, %c256_160] : memref<16x2560xf32, #tpu.memory_space<vmem>>, vector<16x2048xf32>
    tpu.vector_store %arg14[%c0_159, %c256_160], %173 {strides = array<i32>} : memref<16x2560xf32, #tpu.memory_space<vmem>>, vector<16x2048xf32>,
    %c0_161 = arith.constant 0 : index
    %c0_162 = arith.constant 0 : index
    %175 = vector.load %arg14[%c0_161, %c0_162] : memref<16x2560xf32, #tpu.memory_space<vmem>>, vector<16x2048xf32>
    %c0_163 = arith.constant 0 : index
    %c0_164 = arith.constant 0 : index
    %176 = vector.load %arg16[%c0_163, %c0_164] : memref<80x2048xf32, #tpu.memory_space<vmem>>, vector<16x2048xf32>
    tpu.vector_store %arg16[%c0_163, %c0_164], %175 {strides = array<i32>} : memref<80x2048xf32, #tpu.memory_space<vmem>>, vector<16x2048xf32>,
    %c0_165 = arith.constant 0 : index
    %c128_166 = arith.constant 128 : index
    %177 = vector.load %arg14[%c0_165, %c128_166] : memref<16x2560xf32, #tpu.memory_space<vmem>>, vector<16x2048xf32>
    %c16_167 = arith.constant 16 : index
    %c0_168 = arith.constant 0 : index
    %178 = vector.load %arg16[%c16_167, %c0_168] : memref<80x2048xf32, #tpu.memory_space<vmem>>, vector<16x2048xf32>
    tpu.vector_store %arg16[%c16_167, %c0_168], %177 {strides = array<i32>} : memref<80x2048xf32, #tpu.memory_space<vmem>>, vector<16x2048xf32>,
    %c0_169 = arith.constant 0 : index
    %c256_170 = arith.constant 256 : index
    %179 = vector.load %arg14[%c0_169, %c256_170] : memref<16x2560xf32, #tpu.memory_space<vmem>>, vector<16x2048xf32>
    %c32_171 = arith.constant 32 : index
    %c0_172 = arith.constant 0 : index
    %180 = vector.load %arg16[%c32_171, %c0_172] : memref<80x2048xf32, #tpu.memory_space<vmem>>, vector<16x2048xf32>
    tpu.vector_store %arg16[%c32_171, %c0_172], %179 {strides = array<i32>} : memref<80x2048xf32, #tpu.memory_space<vmem>>, vector<16x2048xf32>,
    %c0_173 = arith.constant 0 : index
    %c384_174 = arith.constant 384 : index
    %181 = vector.load %arg14[%c0_173, %c384_174] : memref<16x2560xf32, #tpu.memory_space<vmem>>, vector<16x2048xf32>
    %c48 = arith.constant 48 : index
    %c0_175 = arith.constant 0 : index
    %182 = vector.load %arg16[%c48, %c0_175] : memref<80x2048xf32, #tpu.memory_space<vmem>>, vector<16x2048xf32>
    tpu.vector_store %arg16[%c48, %c0_175], %181 {strides = array<i32>} : memref<80x2048xf32, #tpu.memory_space<vmem>>, vector<16x2048xf32>,
    %c0_176 = arith.constant 0 : index
    %c512_177 = arith.constant 512 : index
    %183 = vector.load %arg14[%c0_176, %c512_177] : memref<16x2560xf32, #tpu.memory_space<vmem>>, vector<16x2048xf32>
    %c64 = arith.constant 64 : index
    %c0_178 = arith.constant 0 : index
    %184 = vector.load %arg16[%c64, %c0_178] : memref<80x2048xf32, #tpu.memory_space<vmem>>, vector<16x2048xf32>
    tpu.vector_store %arg16[%c64, %c0_178], %183 {strides = array<i32>} : memref<80x2048xf32, #tpu.memory_space<vmem>>, vector<16x2048xf32>,
    %c0_179 = arith.constant 0 : index
    %c0_180 = arith.constant 0 : index
    %185 = vector.load %arg6[%c0_179, %c0_180] : memref<16x80xf32, #tpu.memory_space<vmem>>, vector<16x80xf32>
    %c0_181 = arith.constant 0 : index
    %c0_182 = arith.constant 0 : index
    %186 = vector.load %arg16[%c0_181, %c0_182] : memref<80x2048xf32, #tpu.memory_space<vmem>>, vector<80x2048xf32>
    %cst_183 = arith.constant dense<0.000000e+00> : vector<16x2048xf32>
    %187 = tpu.matmul %185, %186, %cst_183 {dimension_numbers = #tpu.dot_dimension_numbers<[1], [0], [0], [1], [0, 0, 1, 1], [], []>} : vector<16x80xf32>, vector<80x2048xf32>, vector<16x2048xf32> -> vector<16x2048xf32>
    %c0_184 = arith.constant 0 : index
    %c0_185 = arith.constant 0 : index
    %188 = vector.load %arg7[%c0_184, %c0_185] : memref<16x1xf32, #tpu.memory_space<vmem>>, vector<16x1xf32>
    %189 = vector.broadcast %188 : vector<16x1xf32> to vector<16x2048xf32>
    %190 = arith.addf %187, %189 : vector<16x2048xf32>
    %cst_186 = arith.constant 0.000000e+00 : f32
    %191 = vector.broadcast %cst_186 : f32 to vector<16x2048xf32>
    %192 = arith.cmpf oge, %190, %191 : vector<16x2048xf32>
    %cst_187 = arith.constant 5.000000e-02 : f32
    %193 = vector.broadcast %cst_187 : f32 to vector<16x2048xf32>
    %194 = arith.mulf %193, %190 : vector<16x2048xf32>
    %195 = arith.select %192, %190, %194 : vector<16x2048xi1>, vector<16x2048xf32>
    %c0_188 = arith.constant 0 : index
    %c256_189 = arith.constant 256 : index
    %196 = vector.load %arg15[%c0_188, %c256_189] : memref<16x2560xf32, #tpu.memory_space<vmem>>, vector<16x2048xf32>
    tpu.vector_store %arg15[%c0_188, %c256_189], %195 {strides = array<i32>} : memref<16x2560xf32, #tpu.memory_space<vmem>>, vector<16x2048xf32>,
    %c0_190 = arith.constant 0 : index
    %c0_191 = arith.constant 0 : index
    %197 = vector.load %arg15[%c0_190, %c0_191] : memref<16x2560xf32, #tpu.memory_space<vmem>>, vector<16x2048xf32>
    %c0_192 = arith.constant 0 : index
    %c0_193 = arith.constant 0 : index
    %198 = vector.load %arg16[%c0_192, %c0_193] : memref<80x2048xf32, #tpu.memory_space<vmem>>, vector<16x2048xf32>
    tpu.vector_store %arg16[%c0_192, %c0_193], %197 {strides = array<i32>} : memref<80x2048xf32, #tpu.memory_space<vmem>>, vector<16x2048xf32>,
    %c0_194 = arith.constant 0 : index
    %c128_195 = arith.constant 128 : index
    %199 = vector.load %arg15[%c0_194, %c128_195] : memref<16x2560xf32, #tpu.memory_space<vmem>>, vector<16x2048xf32>
    %c16_196 = arith.constant 16 : index
    %c0_197 = arith.constant 0 : index
    %200 = vector.load %arg16[%c16_196, %c0_197] : memref<80x2048xf32, #tpu.memory_space<vmem>>, vector<16x2048xf32>
    tpu.vector_store %arg16[%c16_196, %c0_197], %199 {strides = array<i32>} : memref<80x2048xf32, #tpu.memory_space<vmem>>, vector<16x2048xf32>,
    %c0_198 = arith.constant 0 : index
    %c256_199 = arith.constant 256 : index
    %201 = vector.load %arg15[%c0_198, %c256_199] : memref<16x2560xf32, #tpu.memory_space<vmem>>, vector<16x2048xf32>
    %c32_200 = arith.constant 32 : index
    %c0_201 = arith.constant 0 : index
    %202 = vector.load %arg16[%c32_200, %c0_201] : memref<80x2048xf32, #tpu.memory_space<vmem>>, vector<16x2048xf32>
    tpu.vector_store %arg16[%c32_200, %c0_201], %201 {strides = array<i32>} : memref<80x2048xf32, #tpu.memory_space<vmem>>, vector<16x2048xf32>,
    %c0_202 = arith.constant 0 : index
    %c384_203 = arith.constant 384 : index
    %203 = vector.load %arg15[%c0_202, %c384_203] : memref<16x2560xf32, #tpu.memory_space<vmem>>, vector<16x2048xf32>
    %c48_204 = arith.constant 48 : index
    %c0_205 = arith.constant 0 : index
    %204 = vector.load %arg16[%c48_204, %c0_205] : memref<80x2048xf32, #tpu.memory_space<vmem>>, vector<16x2048xf32>
    tpu.vector_store %arg16[%c48_204, %c0_205], %203 {strides = array<i32>} : memref<80x2048xf32, #tpu.memory_space<vmem>>, vector<16x2048xf32>,
    %c0_206 = arith.constant 0 : index
    %c512_207 = arith.constant 512 : index
    %205 = vector.load %arg15[%c0_206, %c512_207] : memref<16x2560xf32, #tpu.memory_space<vmem>>, vector<16x2048xf32>
    %c64_208 = arith.constant 64 : index
    %c0_209 = arith.constant 0 : index
    %206 = vector.load %arg16[%c64_208, %c0_209] : memref<80x2048xf32, #tpu.memory_space<vmem>>, vector<16x2048xf32>
    tpu.vector_store %arg16[%c64_208, %c0_209], %205 {strides = array<i32>} : memref<80x2048xf32, #tpu.memory_space<vmem>>, vector<16x2048xf32>,
    %c0_210 = arith.constant 0 : index
    %c0_211 = arith.constant 0 : index
    %207 = vector.load %arg8[%c0_210, %c0_211] : memref<8x80xf32, #tpu.memory_space<vmem>>, vector<8x80xf32>
    %c0_212 = arith.constant 0 : index
    %c0_213 = arith.constant 0 : index
    %208 = vector.load %arg16[%c0_212, %c0_213] : memref<80x2048xf32, #tpu.memory_space<vmem>>, vector<80x2048xf32>
    %cst_214 = arith.constant dense<0.000000e+00> : vector<8x2048xf32>
    %209 = tpu.matmul %207, %208, %cst_214 {dimension_numbers = #tpu.dot_dimension_numbers<[1], [0], [0], [1], [0, 0, 1, 1], [], []>} : vector<8x80xf32>, vector<80x2048xf32>, vector<8x2048xf32> -> vector<8x2048xf32>
    %c0_215 = arith.constant 0 : index
    %c0_216 = arith.constant 0 : index
    %210 = vector.load %arg9[%c0_215, %c0_216] : memref<8x1xf32, #tpu.memory_space<vmem>>, vector<8x1xf32>
    %211 = vector.broadcast %210 : vector<8x1xf32> to vector<8x2048xf32>
    %212 = arith.addf %209, %211 : vector<8x2048xf32>
    %cst_217 = arith.constant 0.000000e+00 : f32
    %213 = vector.broadcast %cst_217 : f32 to vector<8x2048xf32>
    %214 = arith.cmpf oge, %212, %213 : vector<8x2048xf32>
    %cst_218 = arith.constant 5.000000e-02 : f32
    %215 = vector.broadcast %cst_218 : f32 to vector<8x2048xf32>
    %216 = arith.mulf %215, %212 : vector<8x2048xf32>
    %217 = arith.select %214, %212, %216 : vector<8x2048xi1>, vector<8x2048xf32>
    %c0_219 = arith.constant 0 : index
    %c0_220 = arith.constant 0 : index
    %218 = vector.load %arg10[%c0_219, %c0_220] : memref<8x8xf32, #tpu.memory_space<vmem>>, vector<8x8xf32>
    %cst_221 = arith.constant dense<0.000000e+00> : vector<8x2048xf32>
    %219 = tpu.matmul %218, %217, %cst_221 {dimension_numbers = #tpu.dot_dimension_numbers<[1], [0], [0], [1], [0, 0, 1, 1], [], []>} : vector<8x8xf32>, vector<8x2048xf32>, vector<8x2048xf32> -> vector<8x2048xf32>
    %c0_222 = arith.constant 0 : index
    %c0_223 = arith.constant 0 : index
    %220 = vector.load %arg11[%c0_222, %c0_223] : memref<8x1xf32, #tpu.memory_space<vmem>>, vector<8x1xf32>
    %221 = vector.broadcast %220 : vector<8x1xf32> to vector<8x2048xf32>
    %222 = arith.addf %219, %221 : vector<8x2048xf32>
    %c0_224 = arith.constant 0 : index
    %c0_225 = arith.constant 0 : index
    %223 = vector.load %arg12[%c0_224, %c0_225] : memref<8x2048xf32, #tpu.memory_space<vmem>>, vector<8x2048xf32>
    tpu.vector_store %arg12[%c0_224, %c0_225], %222 {strides = array<i32>} : memref<8x2048xf32, #tpu.memory_space<vmem>>, vector<8x2048xf32>,
    return
  }
  func.func @transform_0(%arg0: i32) -> (i32, i32) {
    %c0_i32 = arith.constant 0 : i32
    %c0_i32_0 = arith.constant 0 : i32
    return %c0_i32, %arg0 : i32, i32
  }
  func.func @transform_1(%arg0: i32) -> (i32, i32) {
    %c0_i32 = arith.constant 0 : i32
    %c0_i32_0 = arith.constant 0 : i32
    %c0_i32_1 = arith.constant 0 : i32
    return %c0_i32, %c0_i32_0 : i32, i32
  }
  func.func @transform_2(%arg0: i32) -> (i32, i32) {
    %c0_i32 = arith.constant 0 : i32
    %c0_i32_0 = arith.constant 0 : i32
    %c0_i32_1 = arith.constant 0 : i32
    return %c0_i32, %c0_i32_0 : i32, i32
  }
  func.func @transform_3(%arg0: i32) -> (i32, i32) {
    %c0_i32 = arith.constant 0 : i32
    %c0_i32_0 = arith.constant 0 : i32
    %c0_i32_1 = arith.constant 0 : i32
    return %c0_i32, %c0_i32_0 : i32, i32
  }
  func.func @transform_4(%arg0: i32) -> (i32, i32) {
    %c0_i32 = arith.constant 0 : i32
    %c0_i32_0 = arith.constant 0 : i32
    %c0_i32_1 = arith.constant 0 : i32
    return %c0_i32, %c0_i32_0 : i32, i32
  }
  func.func @transform_5(%arg0: i32) -> (i32, i32) {
    %c0_i32 = arith.constant 0 : i32
    %c0_i32_0 = arith.constant 0 : i32
    %c0_i32_1 = arith.constant 0 : i32
    return %c0_i32, %c0_i32_0 : i32, i32
  }
  func.func @transform_6(%arg0: i32) -> (i32, i32) {
    %c0_i32 = arith.constant 0 : i32
    %c0_i32_0 = arith.constant 0 : i32
    %c0_i32_1 = arith.constant 0 : i32
    return %c0_i32, %c0_i32_0 : i32, i32
  }
  func.func @transform_7(%arg0: i32) -> (i32, i32) {
    %c0_i32 = arith.constant 0 : i32
    %c0_i32_0 = arith.constant 0 : i32
    %c0_i32_1 = arith.constant 0 : i32
    return %c0_i32, %c0_i32_0 : i32, i32
  }
  func.func @transform_8(%arg0: i32) -> (i32, i32) {
    %c0_i32 = arith.constant 0 : i32
    %c0_i32_0 = arith.constant 0 : i32
    %c0_i32_1 = arith.constant 0 : i32
    return %c0_i32, %c0_i32_0 : i32, i32
  }
  func.func @transform_9(%arg0: i32) -> (i32, i32) {
    %c0_i32 = arith.constant 0 : i32
    %c0_i32_0 = arith.constant 0 : i32
    %c0_i32_1 = arith.constant 0 : i32
    return %c0_i32, %c0_i32_0 : i32, i32
  }
  func.func @transform_10(%arg0: i32) -> (i32, i32) {
    %c0_i32 = arith.constant 0 : i32
    %c0_i32_0 = arith.constant 0 : i32
    %c0_i32_1 = arith.constant 0 : i32
    return %c0_i32, %c0_i32_0 : i32, i32
  }
  func.func @transform_11(%arg0: i32) -> (i32, i32) {
    %c0_i32 = arith.constant 0 : i32
    %c0_i32_0 = arith.constant 0 : i32
    return %c0_i32, %arg0 : i32, i32
  }
}

</mosaic_0001>

<bundles_post_ra>
// kernel: tpu_custom_call.1
= control target key start
LH: loop header
LB: loop body
LE: loop exit
PB: predicated region body
PF: predicated region fallthrough
CT: control target
= control target key end

     0   :  { %vm139_vm0 = vcmask 261120   ;;  %v4936_v6 = vmov 0   ;;  %s5496_s0 = inlined_call_operand.vmem [shape: f32[32,128], index: 0, kind: input, shape index: {}]   ;;  %s5497_s1 = inlined_call_operand.vmem [shape: f32[64,32], index: 1, kind: input, shape index: {}]   ;;  %s5498_s2 = inlined_call_operand.vmem [shape: f32[64,1], index: 2, kind: input, shape index: {}]   ;;  %s5499_s3 = inlined_call_operand.vmem [shape: f32[16,40], index: 3, kind: input, shape index: {}]   ;;  %s5500_s4 = inlined_call_operand.vmem [shape: f32[16,1], index: 4, kind: input, shape index: {}]   ;;  %s5501_s5 = inlined_call_operand.vmem [shape: f32[16,80], index: 5, kind: input, shape index: {}]   ;;  %s5502_s6 = inlined_call_operand.vmem [shape: f32[16,1], index: 6, kind: input, shape index: {}]   ;;  %s5503_s7 = inlined_call_operand.vmem [shape: f32[8,80], index: 7, kind: input, shape index: {}]   ;;  %s5504_s8 = inlined_call_operand.vmem [shape: f32[8,1], index: 8, kind: input, shape index: {}]   ;;  %s5505_s9 = inlined_call_operand.vmem [shape: f32[8,8], index: 9, kind: input, shape index: {}]   ;;  %s5506_s10 = inlined_call_operand.vmem [shape: f32[8,1], index: 10, kind: input, shape index: {}]   ;;  %s5507_s11 = inlined_call_operand.hbm [shape: f32[8,2048], index: 11, kind: output, shape index: {}]  }
   0x1   :  { %v87_v0 = vld [vmem:[%s5496_s0] sm:$0xff]  ;;  %v88_v1 = vld [vmem:[%s5496_s0 + $0x8] sm:$0xff]  ;;  %v89_v2 = vld [vmem:[%s5496_s0 + $0x10] sm:$0xff]  ;;  %4911 = vset.pattern.permute.xlu1 %v4936_v6  ;;  %4910 = vset.pattern.permute.xlu0 %v4936_v6 }
   0x2   :  { %v4530_v3 = vpack.c.bf16 %v88_v1, %v87_v0  ;;  %v90_v4 = vld [vmem:[%s5496_s0 + $0x18] sm:$0xff]  ;;  %v79_v5 = vld [vmem:[%s5497_s1] sm:$0xff]  ;;  %v97_v10 = vld [vmem:[%s5498_s2 + $0x30] sm:$0xff] }
   0x3   :  { %v4534_v7 = vpack.c.bf16 %v90_v4, %v89_v2  ;;  %4518 = vmatprep.mubr.msk.f32.mxu0 %vm139_vm0, %v79_v5  ;;  %v95_v8 = vld [vmem:[%s5498_s2 + $0x20] sm:$0xff]  ;;  %v93_v11 = vld [vmem:[%s5498_s2 + $0x10] sm:$0xff]  ;;  %v80_v12 = vld [vmem:[%s5497_s1 + $0x8] sm:$0xff] }
   0x4   :  { %4531 = vmatprep.subr.bf16.mxu0 %v4530_v3  ;;  %v91_v9 = vld [vmem:[%s5498_s2] sm:$0xff]  ;;  %121 = vperm.xlu1 %4911, %v95_v8  }
   0x5   :  { %4533 = vmatpush3.bf16.msra.mxu0 %v4530_v3  ;;  %101 = vperm.xlu0 %4910, %v91_v9  }
   0x6   :  { %4535 = vmatprep.subr.bf16.mxu0 %v4534_v7 }
   0x9   :  { %4537 = vmatpush3.bf16.msra.mxu0 %v4534_v7 }
   0xa   :  { %16 = vsyncpa [#allocation7], 0  ;;  %v81_v13 = vld [vmem:[%s5497_s1 + $0x10] sm:$0xff]  ;;  %131 = vperm.xlu1 %4911, %v97_v10   ;;  %111 = vperm.xlu0 %4910, %v93_v11   ;;  %v94_v14 = vld [vmem:[%s5498_s2 + $0x18] sm:$0xff]  ;;  %v4937_v29 = vmov 0.0   ;;  %vm731_vm9 = vcmask 326656  }
   0xb   :  { %v92_v15 = vld [vmem:[%s5498_s2 + $0x8] sm:$0xff]  ;;  %v82_v16 = vld [vmem:[%s5497_s1 + $0x18] sm:$0xff]  ;;  %v83_v17 = vld [vmem:[%s5497_s1 + $0x20] sm:$0xff]  ;;  %40 = vst [vmem:[#allocation2 + $0x8] sm:$0xff] %v4937_v29  ;;  %802 = vmatprep.mubr.f32.mxu1 %v4937_v29 }
   0xc   :  { %4519 = vmatmul.mubr.msk.f32.vlgmr.msra.gmra.mrb[0].mxu0 %vm139_vm0, %v80_v12  ;;  %v98_v18 = vld [vmem:[%s5498_s2 + $0x38] sm:$0xff]  ;;  %v96_v19 = vld [vmem:[%s5498_s2 + $0x28] sm:$0xff]  ;;  %v85_v21 = vld [vmem:[%s5497_s1 + $0x30] sm:$0xff]  ;;  %61 = vst [vmem:[#allocation2 + $0x10] sm:$0xf0] %v4937_v29 }
   0xd   :  { %4521 = vmatprep.mubr.msk.f32.mxu0 %vm139_vm0, %v81_v13  ;;  %v84_v20 = vld [vmem:[%s5497_s1 + $0x28] sm:$0xff]  ;;  %v719_v23 = vld [vmem:[%s5500_s4] sm:$0xff]  ;;  %v86_v24 = vld [vmem:[%s5497_s1 + $0x38] sm:$0xff]  ;;  %39 = vst [vmem:[#allocation2] sm:$0xff] %v4937_v29 }
   0xe   :  { %116 = vperm.xlu1 %4911, %v94_v14   ;;  %106 = vperm.xlu0 %4910, %v92_v15   ;;  %v720_v22 = vld [vmem:[%s5500_s4 + $0x8] sm:$0xff]  ;;  %v1964_v26 = vld [vmem:[%s5502_s6] sm:$0xff]  ;;  %41 = vst [vmem:[#allocation2 + $0x90] sm:$0xff] %v4937_v29  ;;  %42 = vst [vmem:[#allocation2 + $0x98] sm:$0xff] %v4937_v29 }
   0xf   :  { %v1965_v25 = vld [vmem:[%s5502_s6 + $0x8] sm:$0xff]  ;;  %v3834_v27 = vld [vmem:[%s5506_s10] sm:$0xff]  ;;  %62 = vst [vmem:[#allocation2 + $0x18] sm:$0xf0] %v4937_v29  ;;  %63 = vst [vmem:[#allocation2 + $0x20] sm:$0xf0] %v4937_v29 }
  0x10   :  { %4522 = vmatmul.mubr.msk.f32.gmra.mrb[2].mxu0 %vm139_vm0, %v82_v16  ;;  %v3208_v28 = vld [vmem:[%s5504_s8] sm:$0xff]  ;;  %64 = vst [vmem:[#allocation2 + $0x28] sm:$0xf0] %v4937_v29  ;;  %65 = vst [vmem:[#allocation2 + $0x30] sm:$0xf0] %v4937_v29 }
  0x11   :  { %4524 = vmatprep.mubr.msk.f32.mxu0 %vm139_vm0, %v83_v17  ;;  %66 = vst [vmem:[#allocation2 + $0x38] sm:$0xf0] %v4937_v29  ;;  %67 = vst [vmem:[#allocation2 + $0x40] sm:$0xf0] %v4937_v29 }
  0x12   :  { %136 = vperm.xlu1 %4911, %v98_v18   ;;  %126 = vperm.xlu0 %4910, %v96_v19   ;;  %68 = vst [vmem:[#allocation2 + $0x48] sm:$0xf0] %v4937_v29  ;;  %69 = vst [vmem:[#allocation2 + $0x50] sm:$0xf0] %v4937_v29 }
  0x13   :  { %70 = vst [vmem:[#allocation2 + $0x58] sm:$0xf0] %v4937_v29  ;;  %71 = vst [vmem:[#allocation2 + $0x60] sm:$0xf0] %v4937_v29 }
  0x14   :  { %4525 = vmatmul.mubr.msk.f32.gmra.mrb[4].mxu0 %vm139_vm0, %v84_v20  ;;  %72 = vst [vmem:[#allocation2 + $0x68] sm:$0xf0] %v4937_v29  ;;  %73 = vst [vmem:[#allocation2 + $0x70] sm:$0xf0] %v4937_v29 }
  0x15   :  { %4527 = vmatprep.mubr.msk.f32.mxu0 %vm139_vm0, %v85_v21  ;;  %74 = vst [vmem:[#allocation2 + $0x78] sm:$0xf0] %v4937_v29  ;;  %75 = vst [vmem:[#allocation2 + $0x80] sm:$0xf0] %v4937_v29 }
  0x16   :  { %728 = vperm.xlu1 %4911, %v720_v22   ;;  %723 = vperm.xlu0 %4910, %v719_v23   ;;  %76 = vst [vmem:[#allocation2 + $0x88] sm:$0xf0] %v4937_v29  ;;  %60 = vst [vmem:[#allocation2 + $0x8] sm:$0xf0] %v4937_v29 }
  0x17   :  { %59 = vst [vmem:[#allocation2] sm:$0xf0] %v4937_v29  ;;  %77 = vst [vmem:[#allocation2 + $0x90] sm:$0xf0] %v4937_v29 }
  0x18   :  { %4528 = vmatmul.mubr.msk.f32.gmra.mrb[6].mxu0 %vm139_vm0, %v86_v24  ;;  %78 = vst [vmem:[#allocation2 + $0x98] sm:$0xf0] %v4937_v29 }
  0x19   :  { %956 = vmatprep.mubr.f32.mxu0 %v4937_v29 }
  0x1a   :  { %1973 = vperm.xlu1 %4911, %v1965_v25   ;;  %1968 = vperm.xlu0 %4910, %v1964_v26  }
  0x1e   :  { %3837 = vperm.xlu1 %4911, %v3834_v27   ;;  %3211 = vperm.xlu0 %4910, %v3208_v28  }
  0x83   :  { %v122_v31 = vpop.permute.xlu1 %121 }
  0x84   :  { %v102_v30 = vpop.permute.xlu0 %101 }
  0x89   :  { %v112_v32 = vpop.permute.xlu0 %111  ;;  %v5112_v33 = vpop.permute.xlu1 %131 }
  0x8d   :  { %v107_v34 = vpop.permute.xlu0 %106  ;;  %v117_v40 = vpop.permute.xlu1 %116 }
  0x91   :  { %v127_v59 = vpop.permute.xlu0 %126  ;;  %v137_v24 = vpop.permute.xlu1 %136 }
  0xdf   :  { %v4520_v35 = vpop.f32.mrb[0].mxu0 }
  0xe0   :  { %v236_v36 = vadd.f32 %v4520_v35, %v107_v34  ;;  %v230_v37 = vpop.f32.mrb[1].mxu0 }
  0xe1   :  { %v231_v38 = vadd.f32 %v230_v37, %v102_v30 }
  0xe2   :  { %vm270_vm1 = vcmp.ge.f32.partialorder %v236_v36, 0.0  ;;  %v278_v39 = vmul.f32 0.05, %v236_v36 }
  0xe3   :  { %vm269_vm2 = vcmp.ge.f32.partialorder %v231_v38, 0.0  ;;  %v277_v41 = vmul.f32 0.05, %v231_v38  ;;  %v4523_v42 = vpop.f32.mrb[2].mxu0 }
  0xe4   :  { %v286_v43 = vsel %vm270_vm1, %v236_v36, %v278_v39  ;;  %v246_v44 = vadd.f32 %v4523_v42, %v117_v40  ;;  %v240_v45 = vpop.f32.mrb[3].mxu0 }
  0xe5   :  { %316 = vst [vmem:[#allocation2 + $0x50] sm:$0x1] %v286_v43  ;;  %v318_v46 = vrot.slane %v286_v43, 1  ;;  %v321_v47 = vrot.slane %v286_v43, 2  ;;  %v324_v48 = vrot.slane %v286_v43, 3  ;;  %v327_v49 = vrot.slane %v286_v43, 4 }
  0xe6   :  { %v330_v50 = vrot.slane %v286_v43, 5  ;;  %v333_v51 = vrot.slane %v286_v43, 6  ;;  %v336_v52 = vrot.slane %v286_v43, 7  ;;  %v285_v53 = vsel %vm269_vm2, %v231_v38, %v277_v41 }
  0xe7   :  { %320 = vst [vmem:[#allocation2 + $0x58] sm:$0x1] %v318_v46  ;;  %323 = vst [vmem:[#allocation2 + $0x60] sm:$0x1] %v321_v47  ;;  %v295_v54 = vrot.slane %v285_v53, 1  ;;  %v298_v55 = vrot.slane %v285_v53, 2  ;;  %v241_v1 = vadd.f32 %v240_v45, %v112_v32 }
  0xe8   :  { %326 = vst [vmem:[#allocation2 + $0x68] sm:$0x1] %v324_v48  ;;  %329 = vst [vmem:[#allocation2 + $0x70] sm:$0x1] %v327_v49  ;;  %v301_v56 = vrot.slane %v285_v53, 3  ;;  %v304_v57 = vrot.slane %v285_v53, 4 }
  0xe9   :  { %293 = vst [vmem:[#allocation2 + $0x10] sm:$0x1] %v285_v53  ;;  %v4526_v58 = vpop.f32.mrb[4].mxu0  ;;  %332 = vst [vmem:[#allocation2 + $0x78] sm:$0x1] %v330_v50  ;;  %v307_v60 = vrot.slane %v285_v53, 5 }
  0xea   :  { %335 = vst [vmem:[#allocation2 + $0x80] sm:$0x1] %v333_v51  ;;  %338 = vst [vmem:[#allocation2 + $0x88] sm:$0x1] %v336_v52  ;;  %v310_v61 = vrot.slane %v285_v53, 6  ;;  %v313_v62 = vrot.slane %v285_v53, 7  ;;  %v256_v2 = vadd.f32 %v4526_v58, %v127_v59 }
  0xeb   :  { %vm272_vm3 = vcmp.ge.f32.partialorder %v246_v44, 0.0  ;;  %v250_v63 = vpop.f32.mrb[5].mxu0  ;;  %297 = vst [vmem:[#allocation2 + $0x18] sm:$0x1] %v295_v54  ;;  %300 = vst [vmem:[#allocation2 + $0x20] sm:$0x1] %v298_v55 }
  0xec   :  { %303 = vst [vmem:[#allocation2 + $0x28] sm:$0x1] %v301_v56  ;;  %306 = vst [vmem:[#allocation2 + $0x30] sm:$0x1] %v304_v57  ;;  %v280_v0 = vmul.f32 0.05, %v246_v44  ;;  %v251_v3 = vadd.f32 %v250_v63, %v122_v31 }
  0xed   :  { %309 = vst [vmem:[#allocation2 + $0x38] sm:$0x1] %v307_v60  ;;  %312 = vst [vmem:[#allocation2 + $0x40] sm:$0x1] %v310_v61  ;;  %vm271_vm4 = vcmp.ge.f32.partialorder %v241_v1, 0.0  ;;  %vm274_vm5 = vcmp.ge.f32.partialorder %v256_v2, 0.0 }
  0xee   :  { %315 = vst [vmem:[#allocation2 + $0x48] sm:$0x1] %v313_v62  ;;  %v288_v4 = vsel %vm272_vm3, %v246_v44, %v280_v0  ;;  %v279_v5 = vmul.f32 0.05, %v241_v1  ;;  %v4529_v6 = vpop.f32.mrb[6].mxu0  ;;  %vm273_vm6 = vcmp.ge.f32.partialorder %v251_v3, 0.0 }
  0xef   :  { %362 = vst [vmem:[#allocation2 + $0x51] sm:$0x1] %v288_v4  ;;  %v364_v7 = vrot.slane %v288_v4, 1  ;;  %v367_v8 = vrot.slane %v288_v4, 2  ;;  %v370_v9 = vrot.slane %v288_v4, 3  ;;  %v373_v10 = vrot.slane %v288_v4, 4 }
  0xf0   :  { %v260_v11 = vpop.f32.mrb[7].mxu0  ;;  %v376_v12 = vrot.slane %v288_v4, 5  ;;  %v379_v13 = vrot.slane %v288_v4, 6  ;;  %v382_v14 = vrot.slane %v288_v4, 7  ;;  %v287_v15 = vsel %vm271_vm4, %v241_v1, %v279_v5  ;;  %v478_v63 = vld [vmem:[#allocation2 + $0x8] sm:$0xff]  ;;  %v477_v0 = vld [vmem:[#allocation2] sm:$0xff] }
  0xf1   :  { %366 = vst [vmem:[#allocation2 + $0x59] sm:$0x1] %v364_v7  ;;  %369 = vst [vmem:[#allocation2 + $0x61] sm:$0x1] %v367_v8  ;;  %v341_v16 = vrot.slane %v287_v15, 1  ;;  %v344_v17 = vrot.slane %v287_v15, 2  ;;  %v266_v27 = vadd.f32 %v4529_v6, %v137_v24  ;;  %v261_v28 = vadd.f32 %v260_v11, %v5112_v33 }
  0xf2   :  { %372 = vst [vmem:[#allocation2 + $0x69] sm:$0x1] %v370_v9  ;;  %375 = vst [vmem:[#allocation2 + $0x71] sm:$0x1] %v373_v10  ;;  %v347_v18 = vrot.slane %v287_v15, 3  ;;  %v350_v19 = vrot.slane %v287_v15, 4 }
  0xf3   :  { %339 = vst [vmem:[#allocation2 + $0x11] sm:$0x1] %v287_v15  ;;  %378 = vst [vmem:[#allocation2 + $0x79] sm:$0x1] %v376_v12  ;;  %v353_v20 = vrot.slane %v287_v15, 5  ;;  %v356_v21 = vrot.slane %v287_v15, 6 }
  0xf4   :  { %381 = vst [vmem:[#allocation2 + $0x81] sm:$0x1] %v379_v13  ;;  %384 = vst [vmem:[#allocation2 + $0x89] sm:$0x1] %v382_v14  ;;  %v359_v22 = vrot.slane %v287_v15, 7  ;;  %vm276_vm7 = vcmp.ge.f32.partialorder %v266_v27, 0.0 }
  0xf5   :  { %v282_v23 = vmul.f32 0.05, %v256_v2  ;;  %343 = vst [vmem:[#allocation2 + $0x19] sm:$0x1] %v341_v16  ;;  %346 = vst [vmem:[#allocation2 + $0x21] sm:$0x1] %v344_v17 }
  0xf6   :  { %349 = vst [vmem:[#allocation2 + $0x29] sm:$0x1] %v347_v18  ;;  %352 = vst [vmem:[#allocation2 + $0x31] sm:$0x1] %v350_v19  ;;  %v281_v25 = vmul.f32 0.05, %v251_v3 }
  0xf7   :  { %355 = vst [vmem:[#allocation2 + $0x39] sm:$0x1] %v353_v20  ;;  %358 = vst [vmem:[#allocation2 + $0x41] sm:$0x1] %v356_v21  ;;  %v290_v26 = vsel %vm274_vm5, %v256_v2, %v282_v23  ;;  %v284_v45 = vmul.f32 0.05, %v266_v27  ;;  %v4540_v2 = vpack.c.bf16 %v478_v63, %v477_v0 }
  0xf8   :  { %361 = vst [vmem:[#allocation2 + $0x49] sm:$0x1] %v359_v22  ;;  %408 = vst [vmem:[#allocation2 + $0x52] sm:$0x1] %v290_v26  ;;  %v410_v30 = vrot.slane %v290_v26, 1  ;;  %v413_v31 = vrot.slane %v290_v26, 2  ;;  %v289_v38 = vsel %vm273_vm6, %v251_v3, %v281_v25 }
  0xf9   :  { %v416_v32 = vrot.slane %v290_v26, 3  ;;  %v419_v34 = vrot.slane %v290_v26, 4  ;;  %v422_v35 = vrot.slane %v290_v26, 5  ;;  %v425_v36 = vrot.slane %v290_v26, 6  ;;  %385 = vst [vmem:[#allocation2 + $0x12] sm:$0x1] %v289_v38 }
  0xfa   :  { %v428_v37 = vrot.slane %v290_v26, 7  ;;  %412 = vst [vmem:[#allocation2 + $0x5a] sm:$0x1] %v410_v30  ;;  %415 = vst [vmem:[#allocation2 + $0x62] sm:$0x1] %v413_v31  ;;  %v387_v39 = vrot.slane %v289_v38, 1  ;;  %v292_v47 = vsel %vm276_vm7, %v266_v27, %v284_v45 }
  0xfb   :  { %418 = vst [vmem:[#allocation2 + $0x6a] sm:$0x1] %v416_v32  ;;  %421 = vst [vmem:[#allocation2 + $0x72] sm:$0x1] %v419_v34  ;;  %v390_v40 = vrot.slane %v289_v38, 2  ;;  %v393_v41 = vrot.slane %v289_v38, 3 }
  0xfc   :  { %v396_v42 = vrot.slane %v289_v38, 4  ;;  %424 = vst [vmem:[#allocation2 + $0x7a] sm:$0x1] %v422_v35  ;;  %427 = vst [vmem:[#allocation2 + $0x82] sm:$0x1] %v425_v36  ;;  %v399_v33 = vrot.slane %v289_v38, 5 }
  0xfd   :  { %430 = vst [vmem:[#allocation2 + $0x8a] sm:$0x1] %v428_v37  ;;  %v402_v43 = vrot.slane %v289_v38, 6  ;;  %v405_v44 = vrot.slane %v289_v38, 7  ;;  %389 = vst [vmem:[#allocation2 + $0x1a] sm:$0x1] %v387_v39 }
  0xfe   :  { %392 = vst [vmem:[#allocation2 + $0x22] sm:$0x1] %v390_v40  ;;  %395 = vst [vmem:[#allocation2 + $0x2a] sm:$0x1] %v393_v41  ;;  %vm275_vm8 = vcmp.ge.f32.partialorder %v261_v28, 0.0  ;;  %v456_v49 = vrot.slane %v292_v47, 1 }
  0xff   :  { %398 = vst [vmem:[#allocation2 + $0x32] sm:$0x1] %v396_v42  ;;  %v283_v46 = vmul.f32 0.05, %v261_v28  ;;  %401 = vst [vmem:[#allocation2 + $0x3a] sm:$0x1] %v399_v33  ;;  %v5177_v42 = vpop.permute.xlu0 %723 }
 0x100   :  { %404 = vst [vmem:[#allocation2 + $0x42] sm:$0x1] %v402_v43  ;;  %407 = vst [vmem:[#allocation2 + $0x4a] sm:$0x1] %v405_v44  ;;  %v459_v50 = vrot.slane %v292_v47, 2  ;;  %v462_v51 = vrot.slane %v292_v47, 3 }
 0x101   :  { %v291_v48 = vsel %vm275_vm8, %v261_v28, %v283_v46  ;;  %454 = vst [vmem:[#allocation2 + $0x53] sm:$0x1] %v292_v47  ;;  %v465_v52 = vrot.slane %v292_v47, 4  ;;  %v468_v53 = vrot.slane %v292_v47, 5  ;;  %v471_v54 = vrot.slane %v292_v47, 6  ;;  %v5120_v16 = vld [vmem:[%s5499_s3] sm:$0xff]  ;;  %v5181_v46 = vpop.permute.xlu1 %728 }
 0x102   :  { %431 = vst [vmem:[#allocation2 + $0x13] sm:$0x1] %v291_v48  ;;  %v474_v55 = vrot.slane %v292_v47, 7  ;;  %v433_v56 = vrot.slane %v291_v48, 1  ;;  %458 = vst [vmem:[#allocation2 + $0x5b] sm:$0x1] %v456_v49 }
 0x103   :  { %461 = vst [vmem:[#allocation2 + $0x63] sm:$0x1] %v459_v50  ;;  %464 = vst [vmem:[#allocation2 + $0x6b] sm:$0x1] %v462_v51  ;;  %v436_v57 = vrot.slane %v291_v48, 2  ;;  %v439_v58 = vrot.slane %v291_v48, 3 }
 0x104   :  { %467 = vst [vmem:[#allocation2 + $0x73] sm:$0x1] %v465_v52  ;;  %v442_v59 = vrot.slane %v291_v48, 4  ;;  %v445_v60 = vrot.slane %v291_v48, 5  ;;  %470 = vst [vmem:[#allocation2 + $0x7b] sm:$0x1] %v468_v53 }
 0x105   :  { %473 = vst [vmem:[#allocation2 + $0x83] sm:$0x1] %v471_v54  ;;  %476 = vst [vmem:[#allocation2 + $0x8b] sm:$0x1] %v474_v55  ;;  %v448_v61 = vrot.slane %v291_v48, 6  ;;  %v451_v62 = vrot.slane %v291_v48, 7 }
 0x106   :  { %435 = vst [vmem:[#allocation2 + $0x1b] sm:$0x1] %v433_v56  ;;  %438 = vst [vmem:[#allocation2 + $0x23] sm:$0x1] %v436_v57  ;;  %v5128_v22 = vld [vmem:[%s5499_s3 + $0x8] sm:$0xff]  ;;  %v588_v37 = vld [vmem:[#allocation2 + $0x90] sm:$0xff] }
 0x107   :  { %441 = vst [vmem:[#allocation2 + $0x2b] sm:$0x1] %v439_v58  ;;  %444 = vst [vmem:[#allocation2 + $0x33] sm:$0x1] %v442_v59  ;;  %v620_v40 = vld [vmem:[#allocation2 + $0x98] sm:$0xff]  ;;  %v4938_v41 = vmov 0.0|0.0  }
 0x108   :  { %447 = vst [vmem:[#allocation2 + $0x3b] sm:$0x1] %v445_v60  ;;  %450 = vst [vmem:[#allocation2 + $0x43] sm:$0x1] %v448_v61  ;;  %v518_v18 = vld [vmem:[#allocation2 + $0x50] sm:$0xff] }
 0x109   :  { %453 = vst [vmem:[#allocation2 + $0x4b] sm:$0x1] %v451_v62  ;;  %v510_v1 = vld [vmem:[#allocation2 + $0x10] sm:$0xff]  ;;  %v550_v19 = vld [vmem:[#allocation2 + $0x58] sm:$0xff] }
 0x10a   :  { %v4538_v3 = vpack.c.bf16 %v510_v1, %v478_v63  ;;  %v582_v20 = vld [vmem:[#allocation2 + $0x60] sm:$0xff]  ;;  %v4576_v25 = vpack.c.bf16 %v550_v19, %v518_v18  ;;  %v614_v26 = vld [vmem:[#allocation2 + $0x68] sm:$0xff] }
 0x10b   :  { %v4574_v24 = vpack.c.bf16 %v582_v20, %v550_v19  ;;  %v522_v27 = vld [vmem:[#allocation2 + $0x70] sm:$0xff]  ;;  %v554_v28 = vld [vmem:[#allocation2 + $0x78] sm:$0xff]  ;;  %v4588_v32 = vpack.c.bf16 %v614_v26, %v582_v20 }
 0x10c   :  { %4539 = vmatprep.subr.bf16.mxu1 %v4538_v3  ;;  %v586_v30 = vld [vmem:[#allocation2 + $0x80] sm:$0xff]  ;;  %v4586_v31 = vpack.c.bf16 %v522_v27, %v614_v26  ;;  %v4592_v35 = vpack.c.bf16 %v554_v28, %v522_v27  ;;  %v618_v36 = vld [vmem:[#allocation2 + $0x88] sm:$0xff] }
 0x10d   :  { %v542_v4 = vld [vmem:[#allocation2 + $0x18] sm:$0xff]  ;;  %4541 = vmatpush1.bf16.msra.mxu1 %v4540_v2  ;;  %v574_v5 = vld [vmem:[#allocation2 + $0x20] sm:$0xff]  ;;  %v4590_v34 = vpack.c.bf16 %v586_v30, %v554_v28  ;;  %v4598_v38 = vpack.c.bf16 %v588_v37, %v618_v36  ;;  %v4600_v39 = vpack.c.bf16 %v618_v36, %v586_v30 }
 0x10e   :  { %v482_v6 = vld [vmem:[#allocation2 + $0x28] sm:$0xff]  ;;  %v514_v7 = vld [vmem:[#allocation2 + $0x30] sm:$0xff]  ;;  %v4542_v8 = vpack.c.bf16 %v574_v5, %v542_v4  ;;  %v4544_v13 = vpack.c.bf16 %v542_v4, %v510_v1 }
 0x10f   :  { %v4554_v9 = vpack.c.bf16 %v514_v7, %v482_v6  ;;  %v4556_v10 = vpack.c.bf16 %v482_v6, %v574_v5  ;;  %v546_v11 = vld [vmem:[#allocation2 + $0x38] sm:$0xff]  ;;  %v578_v12 = vld [vmem:[#allocation2 + $0x40] sm:$0xff] }
 0x110   :  { %4543 = vmatprep.subr.bf16.mxu1 %v4542_v8  ;;  %v4558_v14 = vpack.c.bf16 %v578_v12, %v546_v11  ;;  %v4560_v15 = vpack.c.bf16 %v546_v11, %v514_v7  ;;  %v610_v17 = vld [vmem:[#allocation2 + $0x48] sm:$0xff] }
 0x111   :  { %4555 = vmatprep.subr.bf16.mxu0 %v4554_v9  ;;  %4545 = vmatpush1.bf16.msra.mxu1 %v4544_v13  ;;  %v4570_v21 = vpack.c.bf16 %v518_v18, %v610_v17  ;;  %v4572_v23 = vpack.c.bf16 %v610_v17, %v578_v12 }
 0x112   :  { %4557 = vmatpush1.bf16.msra.mxu0 %v4556_v10  ;;  %746 = vmatprep.subr.mxu1 %v482_v6 }
 0x113   :  { %4559 = vmatprep.subr.bf16.mxu0 %v4558_v14 }
 0x115   :  { %747 = vmatpush1.msra.mxu1 %v574_v5 }
 0x116   :  { %4561 = vmatpush1.bf16.msra.mxu0 %v4560_v15  ;;  %4450 = vmatmul.mubr.msk.f32.vlgmr.msra.gmra.mrb[0].mxu1 %vm731_vm9, %v5120_v16 }
 0x117   :  { %900 = vmatprep.subr.mxu0 %v610_v17  ;;  %4547 = vmatprep.subr.bf16.mxu1 %v4542_v8 }
 0x118   :  { %808 = vmatprep.mubr.f32.mxu1 %v4937_v29  ;;  %4549 = vmatpush1.bf16.msra.mxu1 %v4544_v13 }
 0x119   :  { %4551 = vmatprep.subr.bf16.mxu1 %v4554_v9 }
 0x11a   :  { %901 = vmatpush1.msra.mxu0 %v578_v12  ;;  %4451 = vmatmul.mubr.msk.f32.gmra.mrb[2].mxu1 %vm731_vm9, %v5128_v22 }
 0x11b   :  { %4454 = vmatmul.mubr.msk.f32.vlgmr.msra.gmra.mrb[8].mxu0 %vm731_vm9, %v5120_v16  ;;  %4571 = vmatprep.subr.bf16.mxu0 %v4570_v21 }
 0x11c   :  { %4573 = vmatpush1.bf16.msra.mxu0 %v4572_v23  ;;  %4553 = vmatpush1.bf16.msra.mxu1 %v4556_v10 }
 0x11d   :  { %4575 = vmatprep.subr.bf16.mxu0 %v4574_v24  ;;  %962 = vmatprep.mubr.f32.mxu0 %v4937_v29 }
 0x11e   :  { %823 = vmatprep.subr.mxu1 %v546_v11  ;;  %879 = vmatprep.mubr.f32.mxu1 %v4937_v29 }
 0x11f   :  { %4455 = vmatmul.mubr.msk.f32.gmra.mrb[10].mxu0 %vm731_vm9, %v5128_v22 }
 0x120   :  { %4577 = vmatpush1.bf16.msra.mxu0 %v4576_v25  ;;  %1110 = vmatprep.mubr.f32.mxu0 %v4937_v29 }
 0x121   :  { %1054 = vmatprep.subr.mxu0 %v614_v26  ;;  %824 = vmatpush1.msra.mxu1 %v514_v7 }
 0x122   :  { %4452 = vmatmul.mubr.msk.f32.vlgmr.msra.gmra.mrb[4].mxu1 %vm731_vm9, %v5120_v16  ;;  %4563 = vmatprep.subr.bf16.mxu1 %v4558_v14 }
 0x123   :  { %4565 = vmatpush1.bf16.msra.mxu1 %v4560_v15  ;;  %885 = vmatprep.mubr.f32.mxu1 %v4937_v29 }
 0x124   :  { %1055 = vmatpush1.msra.mxu0 %v582_v20  ;;  %4567 = vmatprep.subr.bf16.mxu1 %v4570_v21 }
 0x125   :  { %4458 = vmatmul.mubr.msk.f32.vlgmr.msra.gmra.mrb[12].mxu0 %vm731_vm9, %v5120_v16  ;;  %4587 = vmatprep.subr.bf16.mxu0 %v4586_v31 }
 0x126   :  { %4589 = vmatpush1.bf16.msra.mxu0 %v4588_v32  ;;  %4453 = vmatmul.mubr.msk.f32.gmra.mrb[6].mxu1 %vm731_vm9, %v5128_v22 }
 0x127   :  { %4591 = vmatprep.subr.bf16.mxu0 %v4590_v34  ;;  %4569 = vmatpush1.bf16.msra.mxu1 %v4572_v23 }
 0x128   :  { %1116 = vmatprep.mubr.f32.mxu0 %v4937_v29  ;;  %977 = vmatprep.subr.mxu1 %v550_v19 }
 0x129   :  { %4459 = vmatmul.mubr.msk.f32.gmra.mrb[14].mxu0 %vm731_vm9, %v5128_v22  ;;  %1033 = vmatprep.mubr.f32.mxu1 %v4937_v29 }
 0x12a   :  { %4593 = vmatpush1.bf16.msra.mxu0 %v4592_v35  ;;  %1264 = vmatprep.mubr.f32.mxu0 %v4937_v29 }
 0x12b   :  { %1208 = vmatprep.subr.mxu0 %v618_v36  ;;  %978 = vmatpush1.msra.mxu1 %v518_v18 }
 0x12c   :  { %4456 = vmatmul.mubr.msk.f32.vlgmr.msra.gmra.mrb[8].mxu1 %vm731_vm9, %v5120_v16  ;;  %4579 = vmatprep.subr.bf16.mxu1 %v4574_v24 }
 0x12d   :  { %4581 = vmatpush1.bf16.msra.mxu1 %v4576_v25  ;;  %1039 = vmatprep.mubr.f32.mxu1 %v4937_v29 }
 0x12e   :  { %1209 = vmatpush1.msra.mxu0 %v586_v30  ;;  %4583 = vmatprep.subr.bf16.mxu1 %v4586_v31 }
 0x12f   :  { %4462 = vmatmul.mubr.msk.f32.vlgmr.msra.gmra.mrb[16].mxu0 %vm731_vm9, %v5120_v16  ;;  %4602 = vmatprep.subr.bf16.mxu0 %v4938_v41 }
 0x130   :  { %4457 = vmatmul.mubr.msk.f32.gmra.mrb[10].mxu1 %vm731_vm9, %v5128_v22  ;;  %1270 = vmatprep.mubr.f32.mxu0 %v4937_v29 }
 0x131   :  { %4585 = vmatpush1.bf16.msra.mxu1 %v4588_v32  ;;  %1187 = vmatprep.mubr.f32.mxu1 %v4937_v29 }
 0x132   :  { %1131 = vmatprep.subr.mxu1 %v554_v28  ;;  %4603 = vmatpush1.bf16.msra.mxu0 %v4938_v41 }
 0x133   :  { %4463 = vmatmul.mubr.msk.f32.gmra.mrb[18].mxu0 %vm731_vm9, %v5128_v22 }
 0x134   :  { %2047 = vmatprep.mubr.f32.mxu0 %v4937_v29 }
 0x135   :  { %1132 = vmatpush1.msra.mxu1 %v522_v27 }
 0x136   :  { %4460 = vmatmul.mubr.msk.f32.vlgmr.msra.gmra.mrb[12].mxu1 %vm731_vm9, %v5120_v16  ;;  %4595 = vmatprep.subr.bf16.mxu1 %v4590_v34 }
 0x137   :  { %4597 = vmatpush1.bf16.msra.mxu1 %v4592_v35  ;;  %1193 = vmatprep.mubr.f32.mxu1 %v4937_v29 }
 0x138   :  { %4599 = vmatprep.subr.bf16.mxu1 %v4598_v38 }
 0x13a   :  { %4461 = vmatmul.mubr.msk.f32.gmra.mrb[14].mxu1 %vm731_vm9, %v5128_v22 }
 0x13b   :  { %4601 = vmatpush1.bf16.msra.mxu1 %v4600_v39  ;;  %1341 = vmatprep.mubr.f32.mxu1 %v4937_v29 }
 0x13c   :  { %1285 = vmatprep.subr.mxu1 %v620_v40 }
 0x13f   :  { %1286 = vmatpush1.msra.mxu1 %v588_v37 }
 0x140   :  { %4464 = vmatmul.mubr.msk.f32.vlgmr.msra.gmra.mrb[16].mxu1 %vm731_vm9, %v5120_v16 }
 0x141   :  { %1347 = vmatprep.mubr.f32.mxu1 %v4937_v29 }
 0x144   :  { %4465 = vmatmul.mubr.msk.f32.gmra.mrb[18].mxu1 %vm731_vm9, %v5128_v22 }
 0x145   :  { %2124 = vmatprep.mubr.f32.mxu1 %v4937_v29 }
 0x1e9   :  { %v804_v33 = vpop.f32.mrb[0].mxu1 }
 0x1ea   :  { %v805_v43 = vadd.f32 %v804_v33, %v5177_v42  ;;  %v806_v44 = vpop.f32.mrb[1].mxu1 }
 0x1eb   :  { %v807_v45 = vadd.f32 %v806_v44, %v5177_v42 }
 0x1ec   :  { %v1386_v47 = vmul.f32 0.05, %v805_v43  ;;  %vm1354_vm10 = vcmp.ge.f32.partialorder %v805_v43, 0.0 }
 0x1ed   :  { %v1387_v49 = vmul.f32 0.05, %v807_v45  ;;  %v810_v52 = vpop.f32.mrb[2].mxu1  ;;  %vm1355_vm11 = vcmp.ge.f32.partialorder %v807_v45, 0.0 }
 0x1ee   :  { %v958_v48 = vpop.f32.mrb[8].mxu0  ;;  %v811_v54 = vadd.f32 %v810_v52, %v5181_v46  ;;  %v812_v55 = vpop.f32.mrb[3].mxu1  ;;  %v1418_v58 = vsel %vm1354_vm10, %v805_v43, %v1386_v47 }
 0x1ef   :  { %v959_v50 = vadd.f32 %v958_v48, %v5177_v42  ;;  %v960_v51 = vpop.f32.mrb[9].mxu0  ;;  %v813_v56 = vadd.f32 %v812_v55, %v5181_v46  ;;  %v1419_v59 = vsel %vm1355_vm11, %v807_v45, %v1387_v49 }
 0x1f0   :  { %v961_v53 = vadd.f32 %v960_v51, %v5177_v42  ;;  %vm1370_vm12 = vcmp.ge.f32.partialorder %v811_v54, 0.0  ;;  %v1402_v57 = vmul.f32 0.05, %v811_v54 }
 0x1f1   :  { %vm1358_vm13 = vcmp.ge.f32.partialorder %v959_v50, 0.0  ;;  %vm1371_vm14 = vcmp.ge.f32.partialorder %v813_v56, 0.0  ;;  %v1403_v60 = vmul.f32 0.05, %v813_v56  ;;  %v1390_v62 = vmul.f32 0.05, %v959_v50 }
 0x1f2   :  { %v964_v61 = vpop.f32.mrb[10].mxu0  ;;  %vm1359_vm15 = vcmp.ge.f32.partialorder %v961_v53, 0.0  ;;  %v1434_v1 = vsel %vm1370_vm12, %v811_v54, %v1402_v57  ;;  %v1391_v2 = vmul.f32 0.05, %v961_v53  ;;  %vm1976_vm12 = vcmask 654336  }
 0x1f3   :  { %v965_v63 = vadd.f32 %v964_v61, %v5181_v46  ;;  %v966_v0 = vpop.f32.mrb[11].mxu0  ;;  %v1435_v3 = vsel %vm1371_vm14, %v813_v56, %v1403_v60  ;;  %v4604_v6 = vpack.c.bf16 %v1434_v1, %v1418_v58  ;;  %v1422_v13 = vsel %vm1358_vm13, %v959_v50, %v1390_v62 }
 0x1f4   :  { %v967_v4 = vadd.f32 %v966_v0, %v5181_v46  ;;  %v5189_v7 = vpack.c.bf16 %v1435_v3, %v1419_v59  ;;  %v1423_v17 = vsel %vm1359_vm15, %v961_v53, %v1391_v2 }
 0x1f5   :  { %v881_v5 = vpop.f32.mrb[4].mxu1  ;;  %vm1374_vm0 = vcmp.ge.f32.partialorder %v965_v63, 0.0  ;;  %v1406_v8 = vmul.f32 0.05, %v965_v63  ;;  %4605 = vmatprep.subr.bf16.mxu0 %v4604_v6 }
 0x1f6   :  { %v882_v9 = vadd.f32 %v881_v5, %v5177_v42  ;;  %v883_v10 = vpop.f32.mrb[5].mxu1  ;;  %vm1375_vm1 = vcmp.ge.f32.partialorder %v967_v4, 0.0  ;;  %v1407_v11 = vmul.f32 0.05, %v967_v4  ;;  %4606 = vmatpush1.bf16.msra.mxu0 %v4938_v41  ;;  %4620 = vmatprep.subr.bf16.mxu1 %v5189_v7 }
 0x1f7   :  { %v884_v12 = vadd.f32 %v883_v10, %v5177_v42  ;;  %v1438_v14 = vsel %vm1374_vm0, %v965_v63, %v1406_v8  ;;  %4608 = vmatprep.subr.bf16.mxu0 %v5189_v7  ;;  %4622 = vmatpush1.bf16.msra.mxu1 %v4604_v6 }
 0x1f8   :  { %v1388_v15 = vmul.f32 0.05, %v882_v9  ;;  %v1112_v16 = vpop.f32.mrb[12].mxu0  ;;  %v5197_v18 = vpack.c.bf16 %v1438_v14, %v1422_v13  ;;  %v1439_v19 = vsel %vm1375_vm1, %v967_v4, %v1407_v11  ;;  %vm1356_vm2 = vcmp.ge.f32.partialorder %v882_v9, 0.0 }
 0x1f9   :  { %v1114_v20 = vpop.f32.mrb[13].mxu0  ;;  %v887_v21 = vpop.f32.mrb[6].mxu1  ;;  %v5200_v22 = vpack.c.bf16 %v1439_v19, %v1423_v17  ;;  %v1389_v23 = vmul.f32 0.05, %v884_v12  ;;  %v1113_v24 = vadd.f32 %v1112_v16, %v5177_v42  ;;  %vm1357_vm3 = vcmp.ge.f32.partialorder %v884_v12, 0.0 }
 0x1fa   :  { %v1115_v25 = vadd.f32 %v1114_v20, %v5177_v42  ;;  %v889_v26 = vpop.f32.mrb[7].mxu1  ;;  %v888_v27 = vadd.f32 %v887_v21, %v5181_v46  ;;  %v1420_v30 = vsel %vm1356_vm2, %v882_v9, %v1388_v15  ;;  %4610 = vmatpush1.bf16.msra.mxu0 %v4604_v6  ;;  %v5236_v9 = vld [vmem:[%s5501_s5] sm:$0xff] }
 0x1fb   :  { %v890_v28 = vadd.f32 %v889_v26, %v5181_v46  ;;  %v1421_v34 = vsel %vm1357_vm3, %v884_v12, %v1389_v23  ;;  %vm1362_vm6 = vcmp.ge.f32.partialorder %v1113_v24, 0.0  ;;  %v1394_v35 = vmul.f32 0.05, %v1113_v24 }
 0x1fc   :  { %vm1372_vm4 = vcmp.ge.f32.partialorder %v888_v27, 0.0  ;;  %v1404_v31 = vmul.f32 0.05, %v888_v27  ;;  %vm1363_vm7 = vcmp.ge.f32.partialorder %v1115_v25, 0.0  ;;  %v1118_v36 = vpop.f32.mrb[14].mxu0 }
 0x1fd   :  { %vm1373_vm5 = vcmp.ge.f32.partialorder %v890_v28, 0.0  ;;  %v1405_v32 = vmul.f32 0.05, %v890_v28  ;;  %v1395_v37 = vmul.f32 0.05, %v1115_v25  ;;  %v1119_v40 = vadd.f32 %v1118_v36, %v5181_v46  ;;  %v1120_v33 = vpop.f32.mrb[15].mxu0 }
 0x1fe   :  { %v1436_v38 = vsel %vm1372_vm4, %v888_v27, %v1404_v31  ;;  %v1121_v47 = vadd.f32 %v1120_v33, %v5181_v46  ;;  %v1426_v52 = vsel %vm1362_vm6, %v1113_v24, %v1394_v35  ;;  %v5254_v27 = vld [vmem:[%s5501_s5 + $0x8] sm:$0xff] }
 0x1ff   :  { %v1437_v39 = vsel %vm1373_vm5, %v890_v28, %v1405_v32  ;;  %v1035_v43 = vpop.f32.mrb[8].mxu1  ;;  %v5207_v44 = vpack.c.bf16 %v1436_v38, %v1420_v30  ;;  %vm1378_vm8 = vcmp.ge.f32.partialorder %v1119_v40, 0.0  ;;  %v1410_v50 = vmul.f32 0.05, %v1119_v40 }
 0x200   :  { %v5209_v45 = vpack.c.bf16 %v1437_v39, %v1421_v34  ;;  %v1036_v48 = vadd.f32 %v1035_v43, %v5177_v42  ;;  %v1037_v49 = vpop.f32.mrb[9].mxu1  ;;  %vm1379_vm9 = vcmp.ge.f32.partialorder %v1121_v47, 0.0  ;;  %v1411_v53 = vmul.f32 0.05, %v1121_v47 }
 0x201   :  { %v1038_v51 = vadd.f32 %v1037_v49, %v5177_v42  ;;  %4612 = vmatprep.subr.bf16.mxu0 %v5207_v44  ;;  %4624 = vmatprep.subr.bf16.mxu1 %v5207_v44  ;;  %v1427_v55 = vsel %vm1363_vm7, %v1115_v25, %v1395_v37  ;;  %v1442_v56 = vsel %vm1378_vm8, %v1119_v40, %v1410_v50 }
 0x202   :  { %v1392_v54 = vmul.f32 0.05, %v1036_v48  ;;  %vm1360_vm10 = vcmp.ge.f32.partialorder %v1036_v48, 0.0  ;;  %v1266_v58 = vpop.f32.mrb[16].mxu0  ;;  %4614 = vmatpush1.bf16.msra.mxu0 %v5189_v7  ;;  %4626 = vmatpush1.bf16.msra.mxu1 %v5189_v7  ;;  %v5220_v60 = vpack.c.bf16 %v1442_v56, %v1426_v52  ;;  %v1443_v61 = vsel %vm1379_vm9, %v1121_v47, %v1411_v53 }
 0x203   :  { %v1393_v57 = vmul.f32 0.05, %v1038_v51  ;;  %v1041_v59 = vpop.f32.mrb[10].mxu1  ;;  %vm1361_vm11 = vcmp.ge.f32.partialorder %v1038_v51, 0.0  ;;  %v1267_v62 = vadd.f32 %v1266_v58, %v5177_v42  ;;  %v1268_v63 = vpop.f32.mrb[17].mxu0  ;;  %4616 = vmatprep.subr.bf16.mxu0 %v5209_v45  ;;  %v5224_v1 = vpack.c.bf16 %v1443_v61, %v1427_v55  ;;  %4628 = vmatprep.subr.bf16.mxu1 %v5209_v45 }
 0x204   :  { %v1043_v0 = vpop.f32.mrb[11].mxu1  ;;  %v1269_v2 = vadd.f32 %v1268_v63, %v5177_v42  ;;  %v1042_v3 = vadd.f32 %v1041_v59, %v5181_v46  ;;  %v1424_v4 = vsel %vm1360_vm10, %v1036_v48, %v1392_v54 }
 0x205   :  { %v1044_v5 = vadd.f32 %v1043_v0, %v5181_v46  ;;  %v1425_v7 = vsel %vm1361_vm11, %v1038_v51, %v1393_v57  ;;  %vm1366_vm13 = vcmp.ge.f32.partialorder %v1267_v62, 0.0  ;;  %v1398_v10 = vmul.f32 0.05, %v1267_v62 }
 0x206   :  { %v1272_v6 = vpop.f32.mrb[18].mxu0  ;;  %vm1376_vm14 = vcmp.ge.f32.partialorder %v1042_v3, 0.0  ;;  %v1408_v8 = vmul.f32 0.05, %v1042_v3  ;;  %4618 = vmatpush1.bf16.msra.mxu0 %v5207_v44  ;;  %4630 = vmatpush1.bf16.msra.mxu1 %v5207_v44  ;;  %vm1367_vm0 = vcmp.ge.f32.partialorder %v1269_v2, 0.0 }
 0x207   :  { %vm1377_vm15 = vcmp.ge.f32.partialorder %v1044_v5, 0.0  ;;  %v1409_v11 = vmul.f32 0.05, %v1044_v5  ;;  %v1273_v12 = vadd.f32 %v1272_v6, %v5181_v46  ;;  %v1274_v13 = vpop.f32.mrb[19].mxu0  ;;  %4632 = vmatprep.subr.bf16.mxu1 %v5197_v18  ;;  %4640 = vmatprep.subr.bf16.mxu0 %v5209_v45  ;;  %v1399_v14 = vmul.f32 0.05, %v1269_v2 }
 0x208   :  { %v1440_v15 = vsel %vm1376_vm14, %v1042_v3, %v1408_v8  ;;  %v1275_v16 = vadd.f32 %v1274_v13, %v5181_v46  ;;  %v1430_v28 = vsel %vm1366_vm13, %v1267_v62, %v1398_v10  ;;  %v5376_v8 = vpop.permute.xlu1 %1973 }
 0x209   :  { %v1189_v17 = vpop.f32.mrb[12].mxu1  ;;  %v5242_v19 = vpack.c.bf16 %v1440_v15, %v1424_v4  ;;  %v1441_v20 = vsel %vm1377_vm15, %v1044_v5, %v1409_v11  ;;  %vm1382_vm1 = vcmp.ge.f32.partialorder %v1273_v12, 0.0  ;;  %v1414_v21 = vmul.f32 0.05, %v1273_v12  ;;  %4466 = vmatmul.mubr.msk.f32.vlgmr.msra.gmra.mrb[20].mxu0 %vm1976_vm12, %v5236_v9 }
 0x20a   :  { %v1191_v23 = vpop.f32.mrb[13].mxu1  ;;  %v5246_v24 = vpack.c.bf16 %v1441_v20, %v1425_v7  ;;  %vm1383_vm2 = vcmp.ge.f32.partialorder %v1275_v16, 0.0  ;;  %v1415_v25 = vmul.f32 0.05, %v1275_v16  ;;  %v1190_v26 = vadd.f32 %v1189_v17, %v5177_v42  ;;  %4634 = vmatpush1.bf16.msra.mxu1 %v5209_v45  ;;  %4642 = vmatpush1.bf16.msra.mxu0 %v5207_v44 }
 0x20b   :  { %v1446_v30 = vsel %vm1382_vm1, %v1273_v12, %v1414_v21  ;;  %v1192_v31 = vadd.f32 %v1191_v23, %v5177_v42  ;;  %4636 = vmatprep.subr.bf16.mxu1 %v5200_v22  ;;  %4644 = vmatprep.subr.bf16.mxu0 %v5197_v18  ;;  %v1431_v32 = vsel %vm1367_vm0, %v1269_v2, %v1399_v14 }
 0x20c   :  { %v5261_v34 = vpack.c.bf16 %v1446_v30, %v1430_v28  ;;  %v1447_v35 = vsel %vm1383_vm2, %v1275_v16, %v1415_v25  ;;  %2053 = vmatprep.mubr.f32.mxu0 %v4937_v29  ;;  %v1396_v38 = vmul.f32 0.05, %v1190_v26  ;;  %vm1364_vm3 = vcmp.ge.f32.partialorder %v1190_v26, 0.0 }
 0x20d   :  { %v1195_v36 = vpop.f32.mrb[14].mxu1  ;;  %v5264_v37 = vpack.c.bf16 %v1447_v35, %v1431_v32  ;;  %4467 = vmatmul.mubr.msk.f32.gmra.mrb[22].mxu0 %vm1976_vm12, %v5254_v27  ;;  %v1397_v33 = vmul.f32 0.05, %v1192_v31  ;;  %vm1365_vm4 = vcmp.ge.f32.partialorder %v1192_v31, 0.0 }
 0x20e   :  { %v1196_v39 = vadd.f32 %v1195_v36, %v5181_v46  ;;  %v1197_v40 = vpop.f32.mrb[15].mxu1  ;;  %4638 = vmatpush1.bf16.msra.mxu1 %v5197_v18  ;;  %4646 = vmatpush1.bf16.msra.mxu0 %v5209_v45  ;;  %v1428_v48 = vsel %vm1364_vm3, %v1190_v26, %v1396_v38 }
 0x20f   :  { %v1198_v43 = vadd.f32 %v1197_v40, %v5181_v46  ;;  %4648 = vmatprep.subr.bf16.mxu0 %v5200_v22  ;;  %4660 = vmatprep.subr.bf16.mxu1 %v5200_v22  ;;  %v1429_v50 = vsel %vm1365_vm4, %v1192_v31, %v1397_v33 }
 0x210   :  { %vm1380_vm5 = vcmp.ge.f32.partialorder %v1196_v39, 0.0  ;;  %v1412_v44 = vmul.f32 0.05, %v1196_v39  ;;  %2201 = vmatprep.mubr.f32.mxu0 %v4937_v29 }
 0x211   :  { %vm1381_vm6 = vcmp.ge.f32.partialorder %v1198_v43, 0.0  ;;  %v1413_v47 = vmul.f32 0.05, %v1198_v43  ;;  %4468 = vmatmul.mubr.msk.f32.vlgmr.msra.gmra.mrb[20].mxu1 %vm1976_vm12, %v5236_v9 }
 0x212   :  { %v1444_v49 = vsel %vm1380_vm5, %v1196_v39, %v1412_v44  ;;  %4650 = vmatpush1.bf16.msra.mxu0 %v5197_v18  ;;  %4662 = vmatpush1.bf16.msra.mxu1 %v5197_v18 }
 0x213   :  { %v5277_v51 = vpack.c.bf16 %v1444_v49, %v1428_v48  ;;  %v1445_v45 = vsel %vm1381_vm6, %v1198_v43, %v1413_v47  ;;  %v1343_v52 = vpop.f32.mrb[16].mxu1  ;;  %4652 = vmatprep.subr.bf16.mxu0 %v5242_v19  ;;  %4664 = vmatprep.subr.bf16.mxu1 %v5242_v19 }
 0x214   :  { %v5281_v53 = vpack.c.bf16 %v1445_v45, %v1429_v50  ;;  %v1344_v54 = vadd.f32 %v1343_v52, %v5177_v42  ;;  %v1345_v55 = vpop.f32.mrb[17].mxu1  ;;  %2130 = vmatprep.mubr.f32.mxu1 %v4937_v29 }
 0x215   :  { %v1346_v56 = vadd.f32 %v1345_v55, %v5177_v42  ;;  %4469 = vmatmul.mubr.msk.f32.gmra.mrb[22].mxu1 %vm1976_vm12, %v5254_v27  ;;  %v5391_v55 = vld [vmem:[%s5503_s7] sm:$0xff] }
 0x216   :  { %4654 = vmatpush1.bf16.msra.mxu0 %v5200_v22  ;;  %4666 = vmatpush1.bf16.msra.mxu1 %v5200_v22  ;;  %v1400_v57 = vmul.f32 0.05, %v1344_v54  ;;  %vm1368_vm7 = vcmp.ge.f32.partialorder %v1344_v54, 0.0 }
 0x217   :  { %v1349_v18 = vpop.f32.mrb[18].mxu1  ;;  %4656 = vmatprep.subr.bf16.mxu0 %v5246_v24  ;;  %4668 = vmatprep.subr.bf16.mxu1 %v5246_v24  ;;  %v1401_v42 = vmul.f32 0.05, %v1346_v56  ;;  %vm1369_vm8 = vcmp.ge.f32.partialorder %v1346_v56, 0.0 }
 0x218   :  { %v1350_v58 = vadd.f32 %v1349_v18, %v5181_v46  ;;  %v1351_v59 = vpop.f32.mrb[19].mxu1  ;;  %2278 = vmatprep.mubr.f32.mxu1 %v4937_v29  ;;  %v1432_v63 = vsel %vm1368_vm7, %v1344_v54, %v1400_v57 }
 0x219   :  { %v1352_v61 = vadd.f32 %v1351_v59, %v5181_v46  ;;  %v1433_v3 = vsel %vm1369_vm8, %v1346_v56, %v1401_v42 }
 0x21a   :  { %vm1384_vm9 = vcmp.ge.f32.partialorder %v1350_v58, 0.0  ;;  %v1416_v62 = vmul.f32 0.05, %v1350_v58  ;;  %4658 = vmatpush1.bf16.msra.mxu0 %v5242_v19  ;;  %4670 = vmatpush1.bf16.msra.mxu1 %v5242_v19 }
 0x21b   :  { %vm1385_vm10 = vcmp.ge.f32.partialorder %v1352_v61, 0.0  ;;  %v1417_v22 = vmul.f32 0.05, %v1352_v61  ;;  %4672 = vmatprep.subr.bf16.mxu1 %v5220_v60  ;;  %4680 = vmatprep.subr.bf16.mxu0 %v5246_v24 }
 0x21c   :  { %v1448_v0 = vsel %vm1384_vm9, %v1350_v58, %v1416_v62 }
 0x21d   :  { %v4731_v2 = vpack.c.bf16 %v1448_v0, %v1432_v63  ;;  %v1449_v46 = vsel %vm1385_vm10, %v1352_v61, %v1417_v22  ;;  %4470 = vmatmul.mubr.msk.f32.vlgmr.msra.gmra.mrb[24].mxu0 %vm1976_vm12, %v5236_v9 }
 0x21e   :  { %v4735_v4 = vpack.c.bf16 %v1449_v46, %v1433_v3  ;;  %4674 = vmatpush1.bf16.msra.mxu1 %v5246_v24  ;;  %4682 = vmatpush1.bf16.msra.mxu0 %v5242_v19 }
 0x21f   :  { %4676 = vmatprep.subr.bf16.mxu1 %v5224_v1  ;;  %4684 = vmatprep.subr.bf16.mxu0 %v5220_v60 }
 0x220   :  { %2207 = vmatprep.mubr.f32.mxu0 %v4937_v29 }
 0x221   :  { %4471 = vmatmul.mubr.msk.f32.gmra.mrb[26].mxu0 %vm1976_vm12, %v5254_v27 }
 0x222   :  { %4678 = vmatpush1.bf16.msra.mxu1 %v5220_v60  ;;  %4686 = vmatpush1.bf16.msra.mxu0 %v5246_v24 }
 0x223   :  { %4688 = vmatprep.subr.bf16.mxu0 %v5224_v1  ;;  %4700 = vmatprep.subr.bf16.mxu1 %v5224_v1 }
 0x224   :  { %2355 = vmatprep.mubr.f32.mxu0 %v4937_v29 }
 0x225   :  { %4472 = vmatmul.mubr.msk.f32.vlgmr.msra.gmra.mrb[24].mxu1 %vm1976_vm12, %v5236_v9 }
 0x226   :  { %4690 = vmatpush1.bf16.msra.mxu0 %v5220_v60  ;;  %4702 = vmatpush1.bf16.msra.mxu1 %v5220_v60  ;;  %v5372_v60 = vpop.permute.xlu0 %1968 }
 0x227   :  { %4692 = vmatprep.subr.bf16.mxu0 %v5277_v51  ;;  %4704 = vmatprep.subr.bf16.mxu1 %v5277_v51 }
 0x228   :  { %2284 = vmatprep.mubr.f32.mxu1 %v4937_v29 }
 0x229   :  { %4473 = vmatmul.mubr.msk.f32.gmra.mrb[26].mxu1 %vm1976_vm12, %v5254_v27 }
 0x22a   :  { %4694 = vmatpush1.bf16.msra.mxu0 %v5224_v1  ;;  %4706 = vmatpush1.bf16.msra.mxu1 %v5224_v1 }
 0x22b   :  { %4696 = vmatprep.subr.bf16.mxu0 %v5281_v53  ;;  %4708 = vmatprep.subr.bf16.mxu1 %v5281_v53 }
 0x22c   :  { %2432 = vmatprep.mubr.f32.mxu1 %v4937_v29 }
 0x22e   :  { %4698 = vmatpush1.bf16.msra.mxu0 %v5277_v51  ;;  %4710 = vmatpush1.bf16.msra.mxu1 %v5277_v51 }
 0x22f   :  { %4712 = vmatprep.subr.bf16.mxu1 %v5261_v34  ;;  %4720 = vmatprep.subr.bf16.mxu0 %v5281_v53 }
 0x231   :  { %4474 = vmatmul.mubr.msk.f32.vlgmr.msra.gmra.mrb[28].mxu0 %vm1976_vm12, %v5236_v9 }
 0x232   :  { %4714 = vmatpush1.bf16.msra.mxu1 %v5281_v53  ;;  %4722 = vmatpush1.bf16.msra.mxu0 %v5277_v51 }
 0x233   :  { %4716 = vmatprep.subr.bf16.mxu1 %v5264_v37  ;;  %4724 = vmatprep.subr.bf16.mxu0 %v5261_v34 }
 0x234   :  { %2361 = vmatprep.mubr.f32.mxu0 %v4937_v29 }
 0x235   :  { %4475 = vmatmul.mubr.msk.f32.gmra.mrb[30].mxu0 %vm1976_vm12, %v5254_v27 }
 0x236   :  { %4718 = vmatpush1.bf16.msra.mxu1 %v5261_v34  ;;  %4726 = vmatpush1.bf16.msra.mxu0 %v5281_v53 }
 0x237   :  { %4728 = vmatprep.subr.bf16.mxu0 %v5264_v37  ;;  %4740 = vmatprep.subr.bf16.mxu1 %v5264_v37 }
 0x238   :  { %2509 = vmatprep.mubr.f32.mxu0 %v4937_v29 }
 0x239   :  { %4476 = vmatmul.mubr.msk.f32.vlgmr.msra.gmra.mrb[28].mxu1 %vm1976_vm12, %v5236_v9 }
 0x23a   :  { %4730 = vmatpush1.bf16.msra.mxu0 %v5261_v34  ;;  %4742 = vmatpush1.bf16.msra.mxu1 %v5261_v34 }
 0x23b   :  { %4732 = vmatprep.subr.bf16.mxu0 %v4731_v2  ;;  %4744 = vmatprep.subr.bf16.mxu1 %v4731_v2 }
 0x23c   :  { %2438 = vmatprep.mubr.f32.mxu1 %v4937_v29 }
 0x23d   :  { %4477 = vmatmul.mubr.msk.f32.gmra.mrb[30].mxu1 %vm1976_vm12, %v5254_v27 }
 0x23e   :  { %4734 = vmatpush1.bf16.msra.mxu0 %v5264_v37  ;;  %4746 = vmatpush1.bf16.msra.mxu1 %v5264_v37 }
 0x23f   :  { %4736 = vmatprep.subr.bf16.mxu0 %v4735_v4  ;;  %4748 = vmatprep.subr.bf16.mxu1 %v4735_v4 }
 0x240   :  { %2586 = vmatprep.mubr.f32.mxu1 %v4937_v29 }
 0x242   :  { %4738 = vmatpush1.bf16.msra.mxu0 %v4731_v2  ;;  %4750 = vmatpush1.bf16.msra.mxu1 %v4731_v2 }
 0x243   :  { %4751 = vmatprep.subr.bf16.mxu1 %v4938_v41  ;;  %4754 = vmatprep.subr.bf16.mxu0 %v4938_v41 }
 0x245   :  { %4478 = vmatmul.mubr.msk.f32.vlgmr.msra.gmra.mrb[32].mxu0 %vm1976_vm12, %v5236_v9 }
 0x246   :  { %4753 = vmatpush1.bf16.msra.mxu1 %v4735_v4  ;;  %2515 = vmatprep.mubr.f32.mxu0 %v4937_v29 }
 0x247   :  { %4755 = vmatpush1.bf16.msra.mxu0 %v4938_v41 }
 0x249   :  { %4479 = vmatmul.mubr.msk.f32.gmra.mrb[34].mxu0 %vm1976_vm12, %v5254_v27  ;;  %4480 = vmatmul.mubr.msk.f32.vlgmr.msra.gmra.mrb[32].mxu1 %vm1976_vm12, %v5236_v9 }
 0x24a   :  { %2592 = vmatprep.mubr.f32.mxu1 %v4937_v29  ;;  %3281 = vmatprep.mubr.f32.mxu0 %v4937_v29 }
 0x24d   :  { %4481 = vmatmul.mubr.msk.f32.gmra.mrb[34].mxu1 %vm1976_vm12, %v5254_v27 }
 0x24e   :  { %3352 = vmatprep.mubr.f32.mxu1 %v4937_v29 }
 0x2dc   :  { %v2049_v1 = vpop.f32.mrb[20].mxu0 }
 0x2dd   :  { %v2050_v5 = vadd.f32 %v2049_v1, %v5372_v60  ;;  %v2051_v6 = vpop.f32.mrb[21].mxu0 }
 0x2de   :  { %v2052_v7 = vadd.f32 %v2051_v6, %v5372_v60 }
 0x2df   :  { %v2631_v10 = vmul.f32 0.05, %v2050_v5  ;;  %vm2599_vm11 = vcmp.ge.f32.partialorder %v2050_v5, 0.0 }
 0x2e0   :  { %v2055_v9 = vpop.f32.mrb[22].mxu0  ;;  %v2632_v13 = vmul.f32 0.05, %v2052_v7  ;;  %vm2600_vm13 = vcmp.ge.f32.partialorder %v2052_v7, 0.0 }
 0x2e1   :  { %v2056_v11 = vadd.f32 %v2055_v9, %v5376_v8  ;;  %v2057_v12 = vpop.f32.mrb[23].mxu0  ;;  %v2663_v21 = vsel %vm2599_vm11, %v2050_v5, %v2631_v10 }
 0x2e2   :  { %v2058_v14 = vadd.f32 %v2057_v12, %v5376_v8  ;;  %v2664_v24 = vsel %vm2600_vm13, %v2052_v7, %v2632_v13 }
 0x2e3   :  { %vm2615_vm14 = vcmp.ge.f32.partialorder %v2056_v11, 0.0  ;;  %v2647_v15 = vmul.f32 0.05, %v2056_v11 }
 0x2e4   :  { %vm2616_vm15 = vcmp.ge.f32.partialorder %v2058_v14, 0.0  ;;  %v2648_v16 = vmul.f32 0.05, %v2058_v14  ;;  %v2126_v17 = vpop.f32.mrb[20].mxu1 }
 0x2e5   :  { %v2127_v19 = vadd.f32 %v2126_v17, %v5372_v60  ;;  %v2128_v20 = vpop.f32.mrb[21].mxu1  ;;  %v2679_v23 = vsel %vm2615_vm14, %v2056_v11, %v2647_v15 }
 0x2e6   :  { %v2680_v25 = vsel %vm2616_vm15, %v2058_v14, %v2648_v16  ;;  %v2129_v26 = vadd.f32 %v2128_v20, %v5372_v60  ;;  %v4756_v27 = vpack.c.bf16 %v2679_v23, %v2663_v21 }
 0x2e7   :  { %v4759_v28 = vpack.c.bf16 %v2680_v25, %v2664_v24  ;;  %v2633_v31 = vmul.f32 0.05, %v2127_v19  ;;  %vm2601_vm0 = vcmp.ge.f32.partialorder %v2127_v19, 0.0 }
 0x2e8   :  { %v2132_v30 = vpop.f32.mrb[22].mxu1  ;;  %4757 = vmatprep.subr.bf16.mxu0 %v4756_v27  ;;  %v2634_v35 = vmul.f32 0.05, %v2129_v26  ;;  %vm2602_vm1 = vcmp.ge.f32.partialorder %v2129_v26, 0.0 }
 0x2e9   :  { %v2133_v32 = vadd.f32 %v2132_v30, %v5376_v8  ;;  %v2134_v34 = vpop.f32.mrb[23].mxu1  ;;  %4758 = vmatpush1.bf16.msra.mxu0 %v4938_v41  ;;  %4772 = vmatprep.subr.bf16.mxu1 %v4759_v28  ;;  %v2665_v39 = vsel %vm2601_vm0, %v2127_v19, %v2633_v31 }
 0x2ea   :  { %v2135_v36 = vadd.f32 %v2134_v34, %v5376_v8  ;;  %4760 = vmatprep.subr.bf16.mxu0 %v4759_v28  ;;  %4774 = vmatpush1.bf16.msra.mxu1 %v4756_v27  ;;  %v2666_v33 = vsel %vm2602_vm1, %v2129_v26, %v2634_v35 }
 0x2eb   :  { %vm2617_vm2 = vcmp.ge.f32.partialorder %v2133_v32, 0.0  ;;  %v2649_v37 = vmul.f32 0.05, %v2133_v32 }
 0x2ec   :  { %vm2618_vm3 = vcmp.ge.f32.partialorder %v2135_v36, 0.0  ;;  %v2650_v38 = vmul.f32 0.05, %v2135_v36 }
 0x2ed   :  { %v2681_v40 = vsel %vm2617_vm2, %v2133_v32, %v2649_v37  ;;  %4762 = vmatpush1.bf16.msra.mxu0 %v4756_v27 }
 0x2ee   :  { %v4763_v43 = vpack.c.bf16 %v2681_v40, %v2665_v39  ;;  %v2682_v44 = vsel %vm2618_vm3, %v2135_v36, %v2650_v38 }
 0x2ef   :  { %v4767_v47 = vpack.c.bf16 %v2682_v44, %v2666_v33 }
 0x2f0   :  { %v2203_v48 = vpop.f32.mrb[24].mxu0  ;;  %4764 = vmatprep.subr.bf16.mxu0 %v4763_v43  ;;  %4776 = vmatprep.subr.bf16.mxu1 %v4763_v43 }
 0x2f1   :  { %v2204_v49 = vadd.f32 %v2203_v48, %v5372_v60  ;;  %v2205_v50 = vpop.f32.mrb[25].mxu0  ;;  %4766 = vmatpush1.bf16.msra.mxu0 %v4759_v28  ;;  %4778 = vmatpush1.bf16.msra.mxu1 %v4759_v28 }
 0x2f2   :  { %v2206_v51 = vadd.f32 %v2205_v50, %v5372_v60  ;;  %4768 = vmatprep.subr.bf16.mxu0 %v4767_v47  ;;  %4780 = vmatprep.subr.bf16.mxu1 %v4767_v47 }
 0x2f3   :  { %v2635_v52 = vmul.f32 0.05, %v2204_v49  ;;  %vm2603_vm4 = vcmp.ge.f32.partialorder %v2204_v49, 0.0 }
 0x2f4   :  { %v2209_v45 = vpop.f32.mrb[26].mxu0  ;;  %v2636_v56 = vmul.f32 0.05, %v2206_v51  ;;  %vm2604_vm5 = vcmp.ge.f32.partialorder %v2206_v51, 0.0 }
 0x2f5   :  { %v2210_v53 = vadd.f32 %v2209_v45, %v5376_v8  ;;  %v2211_v54 = vpop.f32.mrb[27].mxu0  ;;  %4770 = vmatpush1.bf16.msra.mxu0 %v4763_v43  ;;  %4782 = vmatpush1.bf16.msra.mxu1 %v4763_v43  ;;  %v2667_v42 = vsel %vm2603_vm4, %v2204_v49, %v2635_v52 }
 0x2f6   :  { %v2212_v18 = vadd.f32 %v2211_v54, %v5376_v8  ;;  %4792 = vmatprep.subr.bf16.mxu0 %v4767_v47  ;;  %v2668_v63 = vsel %vm2604_vm5, %v2206_v51, %v2636_v56 }
 0x2f7   :  { %vm2619_vm6 = vcmp.ge.f32.partialorder %v2210_v53, 0.0  ;;  %v2651_v57 = vmul.f32 0.05, %v2210_v53 }
 0x2f8   :  { %vm2620_vm7 = vcmp.ge.f32.partialorder %v2212_v18, 0.0  ;;  %v2652_v58 = vmul.f32 0.05, %v2212_v18  ;;  %v2280_v59 = vpop.f32.mrb[24].mxu1  ;;  %4482 = vmatmul.mubr.msk.f32.vlgmr.msra.gmra.mrb[36].mxu0 %vm1976_vm12, %v5391_v55 }
 0x2f9   :  { %v2683_v61 = vsel %vm2619_vm6, %v2210_v53, %v2651_v57  ;;  %v2281_v62 = vadd.f32 %v2280_v59, %v5372_v60  ;;  %v2282_v22 = vpop.f32.mrb[25].mxu1  ;;  %4794 = vmatpush1.bf16.msra.mxu0 %v4763_v43  ;;  %3423 = vmatprep.mubr.f32.mxu0 %v4937_v29 }
 0x2fa   :  { %v4783_v0 = vpack.c.bf16 %v2683_v61, %v2667_v42  ;;  %v2684_v2 = vsel %vm2620_vm7, %v2212_v18, %v2652_v58  ;;  %v2283_v3 = vadd.f32 %v2282_v22, %v5372_v60 }
 0x2fb   :  { %v4787_v46 = vpack.c.bf16 %v2684_v2, %v2668_v63  ;;  %v2637_v1 = vmul.f32 0.05, %v2281_v62  ;;  %vm2605_vm8 = vcmp.ge.f32.partialorder %v2281_v62, 0.0 }
 0x2fc   :  { %v2286_v4 = vpop.f32.mrb[26].mxu1  ;;  %4784 = vmatprep.subr.bf16.mxu1 %v4783_v0  ;;  %4796 = vmatprep.subr.bf16.mxu0 %v4783_v0  ;;  %v2638_v7 = vmul.f32 0.05, %v2283_v3  ;;  %vm2606_vm9 = vcmp.ge.f32.partialorder %v2283_v3, 0.0 }
 0x2fd   :  { %v2287_v5 = vadd.f32 %v2286_v4, %v5376_v8  ;;  %v2288_v6 = vpop.f32.mrb[27].mxu1  ;;  %4786 = vmatpush1.bf16.msra.mxu1 %v4767_v47  ;;  %4798 = vmatpush1.bf16.msra.mxu0 %v4767_v47  ;;  %v2669_v12 = vsel %vm2605_vm8, %v2281_v62, %v2637_v1 }
 0x2fe   :  { %v2289_v9 = vadd.f32 %v2288_v6, %v5376_v8  ;;  %4788 = vmatprep.subr.bf16.mxu1 %v4787_v46  ;;  %4800 = vmatprep.subr.bf16.mxu0 %v4787_v46  ;;  %v2670_v14 = vsel %vm2606_vm9, %v2283_v3, %v2638_v7 }
 0x2ff   :  { %vm2621_vm10 = vcmp.ge.f32.partialorder %v2287_v5, 0.0  ;;  %v2653_v10 = vmul.f32 0.05, %v2287_v5 }
 0x300   :  { %vm2622_vm11 = vcmp.ge.f32.partialorder %v2289_v9, 0.0  ;;  %v2654_v11 = vmul.f32 0.05, %v2289_v9 }
 0x301   :  { %v2685_v13 = vsel %vm2621_vm10, %v2287_v5, %v2653_v10  ;;  %4790 = vmatpush1.bf16.msra.mxu1 %v4783_v0  ;;  %4802 = vmatpush1.bf16.msra.mxu0 %v4783_v0 }
 0x302   :  { %v4803_v15 = vpack.c.bf16 %v2685_v13, %v2669_v12  ;;  %v2686_v16 = vsel %vm2622_vm11, %v2289_v9, %v2654_v11  ;;  %4812 = vmatprep.subr.bf16.mxu1 %v4787_v46 }
 0x303   :  { %v4807_v17 = vpack.c.bf16 %v2686_v16, %v2670_v14 }
 0x304   :  { %v2357_v19 = vpop.f32.mrb[28].mxu0  ;;  %4483 = vmatmul.mubr.msk.f32.vlgmr.msra.gmra.mrb[36].mxu1 %vm1976_vm12, %v5391_v55  ;;  %4804 = vmatprep.subr.bf16.mxu0 %v4803_v15 }
 0x305   :  { %v2358_v20 = vadd.f32 %v2357_v19, %v5372_v60  ;;  %v2359_v21 = vpop.f32.mrb[29].mxu0  ;;  %4806 = vmatpush1.bf16.msra.mxu0 %v4787_v46  ;;  %4814 = vmatpush1.bf16.msra.mxu1 %v4783_v0 }
 0x306   :  { %v2360_v23 = vadd.f32 %v2359_v21, %v5372_v60  ;;  %4808 = vmatprep.subr.bf16.mxu0 %v4807_v17  ;;  %4816 = vmatprep.subr.bf16.mxu1 %v4803_v15 }
 0x307   :  { %3494 = vmatprep.mubr.f32.mxu1 %v4937_v29  ;;  %v2639_v25 = vmul.f32 0.05, %v2358_v20  ;;  %vm2607_vm13 = vcmp.ge.f32.partialorder %v2358_v20, 0.0 }
 0x308   :  { %v2363_v24 = vpop.f32.mrb[30].mxu0  ;;  %v2640_v28 = vmul.f32 0.05, %v2360_v23  ;;  %vm2608_vm14 = vcmp.ge.f32.partialorder %v2360_v23, 0.0 }
 0x309   :  { %v2364_v26 = vadd.f32 %v2363_v24, %v5376_v8  ;;  %v2365_v27 = vpop.f32.mrb[31].mxu0  ;;  %4810 = vmatpush1.bf16.msra.mxu0 %v4803_v15  ;;  %4818 = vmatpush1.bf16.msra.mxu1 %v4787_v46  ;;  %v2671_v35 = vsel %vm2607_vm13, %v2358_v20, %v2639_v25 }
 0x30a   :  { %v2366_v30 = vadd.f32 %v2365_v27, %v5376_v8  ;;  %4820 = vmatprep.subr.bf16.mxu1 %v4807_v17  ;;  %4832 = vmatprep.subr.bf16.mxu0 %v4807_v17  ;;  %v2672_v39 = vsel %vm2608_vm14, %v2360_v23, %v2640_v28 }
 0x30b   :  { %vm2623_vm15 = vcmp.ge.f32.partialorder %v2364_v26, 0.0  ;;  %v2655_v31 = vmul.f32 0.05, %v2364_v26 }
 0x30c   :  { %vm2624_vm0 = vcmp.ge.f32.partialorder %v2366_v30, 0.0  ;;  %v2656_v32 = vmul.f32 0.05, %v2366_v30  ;;  %v2434_v34 = vpop.f32.mrb[28].mxu1  ;;  %4484 = vmatmul.mubr.msk.f32.vlgmr.msra.gmra.mrb[38].mxu0 %vm1976_vm12, %v5391_v55 }
 0x30d   :  { %v2687_v36 = vsel %vm2623_vm15, %v2364_v26, %v2655_v31  ;;  %v2435_v37 = vadd.f32 %v2434_v34, %v5372_v60  ;;  %v2436_v38 = vpop.f32.mrb[29].mxu1  ;;  %4822 = vmatpush1.bf16.msra.mxu1 %v4803_v15  ;;  %4834 = vmatpush1.bf16.msra.mxu0 %v4803_v15 }
 0x30e   :  { %v4823_v40 = vpack.c.bf16 %v2687_v36, %v2671_v35  ;;  %v2688_v33 = vsel %vm2624_vm0, %v2366_v30, %v2656_v32  ;;  %v2437_v43 = vadd.f32 %v2436_v38, %v5372_v60  ;;  %3565 = vmatprep.mubr.f32.mxu0 %v4937_v29 }
 0x30f   :  { %v4827_v44 = vpack.c.bf16 %v2688_v33, %v2672_v39  ;;  %v2641_v48 = vmul.f32 0.05, %v2435_v37  ;;  %vm2609_vm1 = vcmp.ge.f32.partialorder %v2435_v37, 0.0 }
 0x310   :  { %v2440_v47 = vpop.f32.mrb[30].mxu1  ;;  %4824 = vmatprep.subr.bf16.mxu1 %v4823_v40  ;;  %4836 = vmatprep.subr.bf16.mxu0 %v4823_v40  ;;  %v2642_v51 = vmul.f32 0.05, %v2437_v43  ;;  %vm2610_vm2 = vcmp.ge.f32.partialorder %v2437_v43, 0.0 }
 0x311   :  { %v2441_v49 = vadd.f32 %v2440_v47, %v5376_v8  ;;  %v2442_v50 = vpop.f32.mrb[31].mxu1  ;;  %4826 = vmatpush1.bf16.msra.mxu1 %v4807_v17  ;;  %4838 = vmatpush1.bf16.msra.mxu0 %v4807_v17  ;;  %v2673_v54 = vsel %vm2609_vm1, %v2435_v37, %v2641_v48 }
 0x312   :  { %v2443_v45 = vadd.f32 %v2442_v50, %v5376_v8  ;;  %4828 = vmatprep.subr.bf16.mxu1 %v4827_v44  ;;  %4840 = vmatprep.subr.bf16.mxu0 %v4827_v44  ;;  %v2674_v18 = vsel %vm2610_vm2, %v2437_v43, %v2642_v51 }
 0x313   :  { %vm2625_vm3 = vcmp.ge.f32.partialorder %v2441_v49, 0.0  ;;  %v2657_v52 = vmul.f32 0.05, %v2441_v49 }
 0x314   :  { %vm2626_vm4 = vcmp.ge.f32.partialorder %v2443_v45, 0.0  ;;  %v2658_v53 = vmul.f32 0.05, %v2443_v45 }
 0x315   :  { %v2689_v56 = vsel %vm2625_vm3, %v2441_v49, %v2657_v52  ;;  %4830 = vmatpush1.bf16.msra.mxu1 %v4823_v40  ;;  %4842 = vmatpush1.bf16.msra.mxu0 %v4823_v40 }
 0x316   :  { %v4843_v57 = vpack.c.bf16 %v2689_v56, %v2673_v54  ;;  %v2690_v58 = vsel %vm2626_vm4, %v2443_v45, %v2658_v53  ;;  %4852 = vmatprep.subr.bf16.mxu1 %v4827_v44 }
 0x317   :  { %v4847_v59 = vpack.c.bf16 %v2690_v58, %v2674_v18 }
 0x318   :  { %v2511_v42 = vpop.f32.mrb[32].mxu0  ;;  %4485 = vmatmul.mubr.msk.f32.vlgmr.msra.gmra.mrb[38].mxu1 %vm1976_vm12, %v5391_v55  ;;  %4844 = vmatprep.subr.bf16.mxu0 %v4843_v57 }
 0x319   :  { %v2512_v61 = vadd.f32 %v2511_v42, %v5372_v60  ;;  %v2513_v62 = vpop.f32.mrb[33].mxu0  ;;  %4846 = vmatpush1.bf16.msra.mxu0 %v4827_v44  ;;  %4854 = vmatpush1.bf16.msra.mxu1 %v4823_v40 }
 0x31a   :  { %v2514_v22 = vadd.f32 %v2513_v62, %v5372_v60  ;;  %4848 = vmatprep.subr.bf16.mxu0 %v4847_v59  ;;  %4856 = vmatprep.subr.bf16.mxu1 %v4843_v57 }
 0x31b   :  { %3636 = vmatprep.mubr.f32.mxu1 %v4937_v29  ;;  %v2643_v2 = vmul.f32 0.05, %v2512_v61  ;;  %vm2611_vm5 = vcmp.ge.f32.partialorder %v2512_v61, 0.0 }
 0x31c   :  { %v2517_v63 = vpop.f32.mrb[34].mxu0  ;;  %v2588_v0 = vpop.f32.mrb[32].mxu1  ;;  %v2644_v3 = vmul.f32 0.05, %v2514_v22  ;;  %vm2612_vm6 = vcmp.ge.f32.partialorder %v2514_v22, 0.0 }
 0x31d   :  { %v2518_v46 = vadd.f32 %v2517_v63, %v5376_v8  ;;  %v2519_v4 = vpop.f32.mrb[35].mxu0  ;;  %v2590_v1 = vpop.f32.mrb[33].mxu1  ;;  %4850 = vmatpush1.bf16.msra.mxu0 %v4843_v57  ;;  %4858 = vmatpush1.bf16.msra.mxu1 %v4827_v44  ;;  %v2589_v5 = vadd.f32 %v2588_v0, %v5372_v60  ;;  %v2675_v11 = vsel %vm2611_vm5, %v2512_v61, %v2643_v2 }
 0x31e   :  { %v2520_v6 = vadd.f32 %v2519_v4, %v5376_v8  ;;  %4860 = vmatprep.subr.bf16.mxu1 %v4847_v59  ;;  %4872 = vmatprep.subr.bf16.mxu0 %v4847_v59  ;;  %v2591_v9 = vadd.f32 %v2590_v1, %v5372_v60  ;;  %v2676_v12 = vsel %vm2612_vm6, %v2514_v22, %v2644_v3 }
 0x31f   :  { %vm2627_vm7 = vcmp.ge.f32.partialorder %v2518_v46, 0.0  ;;  %v2659_v7 = vmul.f32 0.05, %v2518_v46  ;;  %v2645_v16 = vmul.f32 0.05, %v2589_v5  ;;  %vm2613_vm9 = vcmp.ge.f32.partialorder %v2589_v5, 0.0 }
 0x320   :  { %vm2628_vm8 = vcmp.ge.f32.partialorder %v2520_v6, 0.0  ;;  %v2660_v10 = vmul.f32 0.05, %v2520_v6  ;;  %4486 = vmatmul.mubr.msk.f32.vlgmr.msra.gmra.mrb[40].mxu0 %vm1976_vm12, %v5391_v55  ;;  %v2594_v14 = vpop.f32.mrb[34].mxu1  ;;  %v2646_v21 = vmul.f32 0.05, %v2591_v9 }
 0x321   :  { %v2691_v13 = vsel %vm2627_vm7, %v2518_v46, %v2659_v7  ;;  %4862 = vmatpush1.bf16.msra.mxu1 %v4843_v57  ;;  %4874 = vmatpush1.bf16.msra.mxu0 %v4843_v57  ;;  %v2595_v19 = vadd.f32 %v2594_v14, %v5376_v8  ;;  %v2596_v20 = vpop.f32.mrb[35].mxu1  ;;  %vm2614_vm10 = vcmp.ge.f32.partialorder %v2591_v9, 0.0  ;;  %v2677_v26 = vsel %vm2613_vm9, %v2589_v5, %v2645_v16 }
 0x322   :  { %v4863_v15 = vpack.c.bf16 %v2691_v13, %v2675_v11  ;;  %v2692_v17 = vsel %vm2628_vm8, %v2520_v6, %v2660_v10  ;;  %3707 = vmatprep.mubr.f32.mxu0 %v4937_v29  ;;  %v2597_v23 = vadd.f32 %v2596_v20, %v5376_v8  ;;  %v2678_v30 = vsel %vm2614_vm10, %v2591_v9, %v2646_v21  ;;  %v5439_v8 = vpop.permute.xlu0 %3211 }
 0x323   :  { %v4867_v60 = vpack.c.bf16 %v2692_v17, %v2676_v12  ;;  %vm2629_vm11 = vcmp.ge.f32.partialorder %v2595_v19, 0.0  ;;  %v2661_v24 = vmul.f32 0.05, %v2595_v19 }
 0x324   :  { %4864 = vmatprep.subr.bf16.mxu1 %v4863_v15  ;;  %4876 = vmatprep.subr.bf16.mxu0 %v4863_v15  ;;  %vm2630_vm13 = vcmp.ge.f32.partialorder %v2597_v23, 0.0  ;;  %v2662_v25 = vmul.f32 0.05, %v2597_v23 }
 0x325   :  { %4866 = vmatpush1.bf16.msra.mxu1 %v4847_v59  ;;  %4878 = vmatpush1.bf16.msra.mxu0 %v4847_v59  ;;  %v2693_v27 = vsel %vm2629_vm11, %v2595_v19, %v2661_v24 }
 0x326   :  { %4868 = vmatprep.subr.bf16.mxu1 %v4867_v60  ;;  %4880 = vmatprep.subr.bf16.mxu0 %v4867_v60  ;;  %v4883_v28 = vpack.c.bf16 %v2693_v27, %v2677_v26  ;;  %v2694_v31 = vsel %vm2630_vm13, %v2597_v23, %v2662_v25 }
 0x327   :  { %v4887_v32 = vpack.c.bf16 %v2694_v31, %v2678_v30 }
 0x329   :  { %4870 = vmatpush1.bf16.msra.mxu1 %v4863_v15  ;;  %4882 = vmatpush1.bf16.msra.mxu0 %v4863_v15 }
 0x32a   :  { %4884 = vmatprep.subr.bf16.mxu0 %v4883_v28  ;;  %4892 = vmatprep.subr.bf16.mxu1 %v4867_v60 }
 0x32c   :  { %4487 = vmatmul.mubr.msk.f32.vlgmr.msra.gmra.mrb[40].mxu1 %vm1976_vm12, %v5391_v55 }
 0x32d   :  { %4886 = vmatpush1.bf16.msra.mxu0 %v4867_v60  ;;  %4894 = vmatpush1.bf16.msra.mxu1 %v4863_v15 }
 0x32e   :  { %4888 = vmatprep.subr.bf16.mxu0 %v4887_v32  ;;  %4896 = vmatprep.subr.bf16.mxu1 %v4883_v28 }
 0x32f   :  { %3778 = vmatprep.mubr.f32.mxu1 %v4937_v29 }
 0x331   :  { %4890 = vmatpush1.bf16.msra.mxu0 %v4883_v28  ;;  %4898 = vmatpush1.bf16.msra.mxu1 %v4867_v60 }
 0x332   :  { %4900 = vmatprep.subr.bf16.mxu1 %v4887_v32 }
 0x334   :  { %4488 = vmatmul.mubr.msk.f32.vlgmr.msra.gmra.mrb[42].mxu0 %vm1976_vm12, %v5391_v55 }
 0x335   :  { %4902 = vmatpush1.bf16.msra.mxu1 %v4883_v28  ;;  %3979 = vmatprep.mubr.f32.mxu0 %v4937_v29 }
 0x336   :  { %4903 = vmatprep.subr.bf16.mxu1 %v4938_v41  ;;  %v5446_v41 = vld [vmem:[%s5505_s9] sm:$0xff]  ;;  %s4939_s9 = smov [#allocation6]  }
 0x337   :  { %s4434_s12 = sshll.u32 %s4939_s9, 4  ;;  %s4435_s12 = int_to_ptr.vmem [resolvable:$true] %s4434_s12 }
 0x338   :  { %s4912_s13 = scalar_lea.vmem %s4435_s12, 2048  ;;  %p4917_p1 = scmp.lt.s32.totalorder %s4435_s12, %s4435_s12 }
 0x339   :  { %4905 = vmatpush1.bf16.msra.mxu1 %v4887_v32  ;;  %p4913_p0 = scmp.ne.s32.totalorder %s4435_s12, %s4912_s13  ;;  %p4918_p2 = scmp.lt.s32.totalorder %s4912_s13, %s4912_s13 }
 0x33b   :  { %p4919_p3 = por %p4918_p2, %p4917_p1 }
 0x33c   :  { %4489 = vmatmul.mubr.msk.f32.vlgmr.msra.gmra.mrb[42].mxu1 %vm1976_vm12, %v5391_v55  ;;  %vm3840_vm12 = vcmask 64512  }
 0x33d   :  { %3908 = vmatprep.mubr.f32.mxu1 %v4937_v29  ;;  %p4920_p4 = pnand %p4919_p3, %p4913_p0 }
 0x3cb   :  { %v3283_v34 = vpop.f32.mrb[36].mxu0 }
 0x3cc   :  { %v3284_v35 = vadd.f32 %v3283_v34, %v5439_v8  ;;  %v3285_v36 = vpop.f32.mrb[37].mxu0 }
 0x3cd   :  { %v3286_v37 = vadd.f32 %v3285_v36, %v5439_v8  ;;  %v3838_v36 = vpop.permute.xlu1 %3837 }
 0x3ce   :  { %v3801_v38 = vmul.f32 0.05, %v3284_v35  ;;  %vm3785_vm14 = vcmp.ge.f32.partialorder %v3284_v35, 0.0 }
 0x3cf   :  { %v3802_v39 = vmul.f32 0.05, %v3286_v37  ;;  %vm3786_vm15 = vcmp.ge.f32.partialorder %v3286_v37, 0.0 }
 0x3d0   :  { %v3817_v55 = vsel %vm3785_vm14, %v3284_v35, %v3801_v38 }
 0x3d1   :  { %v3818_v40 = vsel %vm3786_vm15, %v3286_v37, %v3802_v39 }
 0x3d2   :  { %3844 = vmatprep.subr.mxu1 %v3818_v40 }
 0x3d3   :  { %3845 = vmatpush1.msra.mxu1 %v3817_v55 }
 0x3d4   :  { %4490 = vmatmul.mubr.msk.f32.vlgmr.msra.gmra.mrb[44].mxu1 %vm3840_vm12, %v5446_v41 }
 0x3d5   :  { %4050 = vmatprep.mubr.f32.mxu1 %v4937_v29 }
 0x3d7   :  { %v3354_v33 = vpop.f32.mrb[36].mxu1 }
 0x3d8   :  { %v3355_v43 = vadd.f32 %v3354_v33, %v5439_v8  ;;  %v3356_v44 = vpop.f32.mrb[37].mxu1 }
 0x3d9   :  { %v3357_v47 = vadd.f32 %v3356_v44, %v5439_v8 }
 0x3da   :  { %v3803_v48 = vmul.f32 0.05, %v3355_v43  ;;  %vm3787_vm0 = vcmp.ge.f32.partialorder %v3355_v43, 0.0 }
 0x3db   :  { %v3804_v49 = vmul.f32 0.05, %v3357_v47  ;;  %vm3788_vm1 = vcmp.ge.f32.partialorder %v3357_v47, 0.0 }
 0x3dc   :  { %v3819_v51 = vsel %vm3787_vm0, %v3355_v43, %v3803_v48 }
 0x3dd   :  { %v3820_v50 = vsel %vm3788_vm1, %v3357_v47, %v3804_v49 }
 0x3de   :  { %3915 = vmatprep.subr.mxu0 %v3820_v50 }
 0x3df   :  { %v3425_v45 = vpop.f32.mrb[38].mxu0  ;;  %3916 = vmatpush1.msra.mxu0 %v3819_v51 }
 0x3e0   :  { %v3426_v52 = vadd.f32 %v3425_v45, %v5439_v8  ;;  %v3427_v53 = vpop.f32.mrb[39].mxu0  ;;  %4491 = vmatmul.mubr.msk.f32.vlgmr.msra.gmra.mrb[44].mxu0 %vm3840_vm12, %v5446_v41 }
 0x3e1   :  { %v3428_v54 = vadd.f32 %v3427_v53, %v5439_v8  ;;  %4121 = vmatprep.mubr.f32.mxu0 %v4937_v29 }
 0x3e2   :  { %v3805_v56 = vmul.f32 0.05, %v3426_v52  ;;  %vm3789_vm2 = vcmp.ge.f32.partialorder %v3426_v52, 0.0 }
 0x3e3   :  { %v3806_v18 = vmul.f32 0.05, %v3428_v54  ;;  %vm3790_vm3 = vcmp.ge.f32.partialorder %v3428_v54, 0.0 }
 0x3e4   :  { %v3821_v58 = vsel %vm3789_vm2, %v3426_v52, %v3805_v56 }
 0x3e5   :  { %v3822_v57 = vsel %vm3790_vm3, %v3428_v54, %v3806_v18 }
 0x3e6   :  { %3986 = vmatprep.subr.mxu1 %v3822_v57 }
 0x3e7   :  { %3987 = vmatpush1.msra.mxu1 %v3821_v58 }
 0x3e8   :  { %4492 = vmatmul.mubr.msk.f32.vlgmr.msra.gmra.mrb[46].mxu1 %vm3840_vm12, %v5446_v41 }
 0x3e9   :  { %4192 = vmatprep.mubr.f32.mxu1 %v4937_v29 }
 0x3eb   :  { %v3496_v59 = vpop.f32.mrb[38].mxu1 }
 0x3ec   :  { %v3497_v42 = vadd.f32 %v3496_v59, %v5439_v8  ;;  %v3498_v61 = vpop.f32.mrb[39].mxu1 }
 0x3ed   :  { %v3499_v62 = vadd.f32 %v3498_v61, %v5439_v8 }
 0x3ee   :  { %v3807_v22 = vmul.f32 0.05, %v3497_v42  ;;  %vm3791_vm4 = vcmp.ge.f32.partialorder %v3497_v42, 0.0 }
 0x3ef   :  { %v3808_v63 = vmul.f32 0.05, %v3499_v62  ;;  %vm3792_vm5 = vcmp.ge.f32.partialorder %v3499_v62, 0.0 }
 0x3f0   :  { %v3823_v2 = vsel %vm3791_vm4, %v3497_v42, %v3807_v22 }
 0x3f1   :  { %v3824_v0 = vsel %vm3792_vm5, %v3499_v62, %v3808_v63 }
 0x3f2   :  { %4057 = vmatprep.subr.mxu0 %v3824_v0 }
 0x3f3   :  { %v3567_v3 = vpop.f32.mrb[40].mxu0  ;;  %4058 = vmatpush1.msra.mxu0 %v3823_v2 }
 0x3f4   :  { %v3568_v46 = vadd.f32 %v3567_v3, %v5439_v8  ;;  %v3569_v4 = vpop.f32.mrb[41].mxu0  ;;  %4493 = vmatmul.mubr.msk.f32.vlgmr.msra.gmra.mrb[46].mxu0 %vm3840_vm12, %v5446_v41 }
 0x3f5   :  { %v3570_v1 = vadd.f32 %v3569_v4, %v5439_v8  ;;  %4263 = vmatprep.mubr.f32.mxu0 %v4937_v29 }
 0x3f6   :  { %v3809_v5 = vmul.f32 0.05, %v3568_v46  ;;  %vm3793_vm6 = vcmp.ge.f32.partialorder %v3568_v46, 0.0 }
 0x3f7   :  { %v3810_v6 = vmul.f32 0.05, %v3570_v1  ;;  %vm3794_vm7 = vcmp.ge.f32.partialorder %v3570_v1, 0.0 }
 0x3f8   :  { %v3825_v9 = vsel %vm3793_vm6, %v3568_v46, %v3809_v5 }
 0x3f9   :  { %v3826_v7 = vsel %vm3794_vm7, %v3570_v1, %v3810_v6 }
 0x3fa   :  { %4128 = vmatprep.subr.mxu1 %v3826_v7 }
 0x3fb   :  { %4129 = vmatpush1.msra.mxu1 %v3825_v9 }
 0x3fc   :  { %4494 = vmatmul.mubr.msk.f32.vlgmr.msra.gmra.mrb[48].mxu1 %vm3840_vm12, %v5446_v41 }
 0x3fd   :  { %4334 = vmatprep.mubr.f32.mxu1 %v4937_v29 }
 0x3ff   :  { %v3638_v10 = vpop.f32.mrb[40].mxu1 }
 0x400   :  { %v3639_v11 = vadd.f32 %v3638_v10, %v5439_v8  ;;  %v3640_v12 = vpop.f32.mrb[41].mxu1 }
 0x401   :  { %v3641_v13 = vadd.f32 %v3640_v12, %v5439_v8 }
 0x402   :  { %v3811_v14 = vmul.f32 0.05, %v3639_v11  ;;  %vm3795_vm8 = vcmp.ge.f32.partialorder %v3639_v11, 0.0 }
 0x403   :  { %v3812_v15 = vmul.f32 0.05, %v3641_v13  ;;  %vm3796_vm9 = vcmp.ge.f32.partialorder %v3641_v13, 0.0 }
 0x404   :  { %v3827_v17 = vsel %vm3795_vm8, %v3639_v11, %v3811_v14 }
 0x405   :  { %v3828_v16 = vsel %vm3796_vm9, %v3641_v13, %v3812_v15 }
 0x406   :  { %4199 = vmatprep.subr.mxu0 %v3828_v16 }
 0x407   :  { %v3709_v19 = vpop.f32.mrb[42].mxu0  ;;  %4200 = vmatpush1.msra.mxu0 %v3827_v17 }
 0x408   :  { %v3710_v20 = vadd.f32 %v3709_v19, %v5439_v8  ;;  %v3711_v60 = vpop.f32.mrb[43].mxu0  ;;  %4495 = vmatmul.mubr.msk.f32.vlgmr.msra.gmra.mrb[48].mxu0 %vm3840_vm12, %v5446_v41 }
 0x409   :  { %v3712_v21 = vadd.f32 %v3711_v60, %v5439_v8  ;;  %4405 = vmatprep.mubr.f32.mxu0 %v4937_v29 }
 0x40a   :  { %v3813_v23 = vmul.f32 0.05, %v3710_v20  ;;  %vm3797_vm10 = vcmp.ge.f32.partialorder %v3710_v20, 0.0 }
 0x40b   :  { %v3814_v24 = vmul.f32 0.05, %v3712_v21  ;;  %vm3798_vm11 = vcmp.ge.f32.partialorder %v3712_v21, 0.0 }
 0x40c   :  { %v3829_v26 = vsel %vm3797_vm10, %v3710_v20, %v3813_v23 }
 0x40d   :  { %v3830_v25 = vsel %vm3798_vm11, %v3712_v21, %v3814_v24 }
 0x40e   :  { %4270 = vmatprep.subr.mxu1 %v3830_v25 }
 0x40f   :  { %v3780_v27 = vpop.f32.mrb[42].mxu1  ;;  %4271 = vmatpush1.msra.mxu1 %v3829_v26 }
 0x410   :  { %v3781_v28 = vadd.f32 %v3780_v27, %v5439_v8  ;;  %v3782_v30 = vpop.f32.mrb[43].mxu1  ;;  %4496 = vmatmul.mubr.msk.f32.vlgmr.msra.gmra.mrb[50].mxu1 %vm3840_vm12, %v5446_v41 }
 0x411   :  { %v3783_v31 = vadd.f32 %v3782_v30, %v5439_v8 }
 0x412   :  { %v3815_v32 = vmul.f32 0.05, %v3781_v28  ;;  %vm3799_vm13 = vcmp.ge.f32.partialorder %v3781_v28, 0.0 }
 0x413   :  { %v3816_v29 = vmul.f32 0.05, %v3783_v31  ;;  %vm3800_vm14 = vcmp.ge.f32.partialorder %v3783_v31, 0.0 }
 0x414   :  { %v3831_v35 = vsel %vm3799_vm13, %v3781_v28, %v3815_v32 }
 0x415   :  { %v3832_v34 = vsel %vm3800_vm14, %v3783_v31, %v3816_v29 }
 0x416   :  { %4341 = vmatprep.subr.mxu0 %v3832_v34 }
 0x417   :  { %4342 = vmatpush1.msra.mxu0 %v3831_v35 }
 0x418   :  { %4497 = vmatmul.mubr.msk.f32.vlgmr.msra.gmra.mrb[50].mxu0 %vm3840_vm12, %v5446_v41 }
 0x4a7   :  { %v3910_v37 = vpop.f32.mrb[44].mxu1 }
 0x4a8   :  { %v3911_v38 = vadd.f32 %v3910_v37, %v3838_v36  ;;  %v3912_v39 = vpop.f32.mrb[45].mxu1 }
 0x4a9   :  { %v3913_v40 = vadd.f32 %v3912_v39, %v3838_v36 }
 0x4aa   :  { %4412 = vst [vmem:[#allocation6] sm:$0xff] %v3911_v38 }
 0x4ab   :  { %4413 = vst [vmem:[#allocation6 + $0x8] sm:$0xff] %v3913_v40 }
 0x4b3   :  { %v3981_v55 = vpop.f32.mrb[44].mxu0 }
 0x4b4   :  { %v3982_v8 = vadd.f32 %v3981_v55, %v3838_v36  ;;  %v3983_v33 = vpop.f32.mrb[45].mxu0 }
 0x4b5   :  { %v3984_v43 = vadd.f32 %v3983_v33, %v3838_v36 }
 0x4b6   :  { %4414 = vst [vmem:[#allocation6 + $0x10] sm:$0xff] %v3982_v8 }
 0x4b7   :  { %4415 = vst [vmem:[#allocation6 + $0x18] sm:$0xff] %v3984_v43 }
 0x4bb   :  { %v4052_v44 = vpop.f32.mrb[46].mxu1 }
 0x4bc   :  { %v4053_v47 = vadd.f32 %v4052_v44, %v3838_v36  ;;  %v4054_v48 = vpop.f32.mrb[47].mxu1 }
 0x4bd   :  { %v4055_v49 = vadd.f32 %v4054_v48, %v3838_v36 }
 0x4be   :  { %4416 = vst [vmem:[#allocation6 + $0x20] sm:$0xff] %v4053_v47 }
 0x4bf   :  { %4417 = vst [vmem:[#allocation6 + $0x28] sm:$0xff] %v4055_v49 }
 0x4c7   :  { %v4123_v41 = vpop.f32.mrb[46].mxu0 }
 0x4c8   :  { %v4124_v50 = vadd.f32 %v4123_v41, %v3838_v36  ;;  %v4125_v51 = vpop.f32.mrb[47].mxu0 }
 0x4c9   :  { %v4126_v45 = vadd.f32 %v4125_v51, %v3838_v36 }
 0x4ca   :  { %4418 = vst [vmem:[#allocation6 + $0x30] sm:$0xff] %v4124_v50 }
 0x4cb   :  { %4419 = vst [vmem:[#allocation6 + $0x38] sm:$0xff] %v4126_v45 }
 0x4cf   :  { %v4194_v52 = vpop.f32.mrb[48].mxu1 }
 0x4d0   :  { %v4195_v53 = vadd.f32 %v4194_v52, %v3838_v36  ;;  %v4196_v54 = vpop.f32.mrb[49].mxu1 }
 0x4d1   :  { %v4197_v56 = vadd.f32 %v4196_v54, %v3838_v36 }
 0x4d2   :  { %4420 = vst [vmem:[#allocation6 + $0x40] sm:$0xff] %v4195_v53 }
 0x4d3   :  { %4421 = vst [vmem:[#allocation6 + $0x48] sm:$0xff] %v4197_v56 }
 0x4db   :  { %v4265_v18 = vpop.f32.mrb[48].mxu0 }
 0x4dc   :  { %v4266_v57 = vadd.f32 %v4265_v18, %v3838_v36  ;;  %v4267_v58 = vpop.f32.mrb[49].mxu0 }
 0x4dd   :  { %v4268_v59 = vadd.f32 %v4267_v58, %v3838_v36 }
 0x4de   :  { %4422 = vst [vmem:[#allocation6 + $0x50] sm:$0xff] %v4266_v57 }
 0x4df   :  { %4423 = vst [vmem:[#allocation6 + $0x58] sm:$0xff] %v4268_v59 }
 0x4e3   :  { %v4336_v42 = vpop.f32.mrb[50].mxu1 }
 0x4e4   :  { %v4337_v61 = vadd.f32 %v4336_v42, %v3838_v36  ;;  %v4338_v62 = vpop.f32.mrb[51].mxu1 }
 0x4e5   :  { %v4339_v22 = vadd.f32 %v4338_v62, %v3838_v36 }
 0x4e6   :  { %4424 = vst [vmem:[#allocation6 + $0x60] sm:$0xff] %v4337_v61 }
 0x4e7   :  { %4425 = vst [vmem:[#allocation6 + $0x68] sm:$0xff] %v4339_v22 }
 0x4eb   :  { %v4407_v63 = vpop.f32.mrb[50].mxu0 }
 0x4ec   :  { %v4408_v0 = vadd.f32 %v4407_v63, %v3838_v36  ;;  %v4409_v2 = vpop.f32.mrb[51].mxu0 }
 0x4ed   :  { %v4410_v3 = vadd.f32 %v4409_v2, %v3838_v36 }
 0x4ee   :  { %4426 = vst [vmem:[#allocation6 + $0x70] sm:$0xff] %v4408_v0 }
 0x4ef   :  { %4427 = vst [vmem:[#allocation6 + $0x78] sm:$0xff] %v4410_v3 }
 0x4f0   :  { %4923 = shalt.err (!%p4920_p4)
}
 0x4f1   :  { %s4924_s16 = scalar_lea.hbm %s5507_s11, 2048 }
 0x4f2   :  { %p4925_p5 = scmp.ne.s32.totalorder %s5507_s11, %s4924_s16  ;;  %p4928_p6 = scmp.lt.u32.totalorder %s4924_s16, %s5507_s11 }
 0x4f4   :  { %p4930_p7 = pnand %p4928_p6, %p4925_p5 }
 0x4f6   :  { %4933 = shalt.err (!%p4930_p7)
}
 0x4f7   :  { %4437 = dma.vmem_to_hbm [thread:$0]  %s4435_s12, 2048, %s5507_s11, [#allocation7]  }
 0x4f8   :  { %4934 = dma.done.wait [#allocation7], 2048  }
 0x4f9   :  { %4935 = vsyncadd [#allocation7], 4294965248 }
 0x4fa   :  { %4441 = vsyncpa [#allocation7], 1 }

</bundles_post_ra>
